<compile_context>
chip_gen: v7x
topology: tpu7x:2x2x1
jax: 0.10.0
libtpu: 0.0.40
codegen_flags: <defaults>
</compile_context>

<pallas_src>
import jax
import jax.numpy as jnp
from jax.experimental import pallas as pl
from jax.experimental.pallas import tpu as pltpu


# ----------------------------------------------------------------------------
# Fused PCBlock kernel
# ----------------------------------------------------------------------------
def _make_pcblock_kernel(H, W, K, pad, dil, Cin, Cout, eps):
    Wp = W + 2 * pad                     # padded row width
    PC = H * Wp                          # compute lanes (corner-flat, stride Wp)
    PAD_FLAT = (H + 2 * pad) * Wp + 2 * pad   # padded-flat lanes (+tail so every tap slice fits)
    D = pad * Wp + pad                   # corner-flat -> padded-flat lane offset
    HW = float(H * W)
    taps = [(kh, kw) for kh in range(K) for kw in range(K)]

    def kernel(xpad_ref, mrow_ref, rmat_ref,
               w1_ref, b1_ref, w2_ref, b2_ref, wp_ref, bp_ref,
               sw1_ref, sb1_ref, sw2_ref, sb2_ref,
               o_ref,
               y1pad_ref, p1_ref, p2_ref):
        # masks in corner-flat layout (1, PC): row 0 = known pixels, row 1 = holes (zero at
        # the padded-width garbage lanes). Loaded once and reused (no repeated broadcasts).
        mr = mrow_ref[0]
        m_known = mr[0:1, :]
        m_hole = mr[1:2, :]
        v_row = m_known + m_hole          # 1 exactly on lanes that map to real output pixels

        # ---- conv1: im2col patches + one bf16 MXU matmul, fused ReLU ----
        for t, (kh, kw) in enumerate(taps):
            s = kh * dil * Wp + kw * dil
            p1_ref[t * Cin:(t + 1) * Cin, :] = xpad_ref[0, :, s:s + PC]
        y1 = jnp.dot(w1_ref[...], p1_ref[...], preferred_element_type=jnp.float32)
        y1 = jnp.maximum(y1 + b1_ref[...], 0.0)                      # (Cout, PC) f32

        # re-embed conv1 output as a zero-padded flat image (VMEM only, no HBM round-trip)
        y1pad_ref[...] = jnp.zeros_like(y1pad_ref)
        y1pad_ref[:, D:D + PC] = (y1 * v_row).astype(y1pad_ref.dtype)

        # ---- conv2: im2col patches + one bf16 MXU matmul ----
        for t, (kh, kw) in enumerate(taps):
            s = kh * dil * Wp + kw * dil
            p2_ref[t * Cout:(t + 1) * Cout, :] = y1pad_ref[:, s:s + PC]
        X = jnp.dot(w2_ref[...], p2_ref[...],
                    preferred_element_type=jnp.float32) + b2_ref[...]  # (Cout, PC) f32

        # ---- PCN statistics: two MXU matmuls vs [valid, hole, known] columns ----
        R = rmat_ref[0]                                               # (PC, 3) f32
        S1 = jnp.dot(X, R, preferred_element_type=jnp.float32)        # [sum_all, sum_hole, sum_known]
        S2 = jnp.dot(X * X, R, preferred_element_type=jnp.float32)
        s_all, s1p, s1q = S1[:, 0:1], S1[:, 1:2], S1[:, 2:3]
        s2p, s2q = S2[:, 1:2], S2[:, 2:3]

        n_q = jnp.sum(m_known, axis=1, keepdims=True)                 # (1, 1) known-pixel count
        n_p = HW - n_q
        inv_np = 1.0 / (n_p + eps)
        inv_nq = 1.0 / (n_q + eps)
        mu_p = s1p * inv_np
        mu_q = s1q * inv_nq
        # one-pass variance over ALL H*W positions of the zero-masked maps (mask is binary)
        var_p = (s2p - 2.0 * mu_p * s1p + HW * mu_p * mu_p) * inv_np
        var_q = (s2q - 2.0 * mu_q * s1q + HW * mu_q * mu_q) * inv_nq
        rstd_p = jax.lax.rsqrt(var_p + eps)                           # 1 / X_p_std
        std_q = jnp.sqrt(var_q + eps)

        # ---- SE block on the global average pool (tiny) ----
        pooled = s_all * (1.0 / HW)                                   # (Cout, 1)
        hid = jnp.maximum(
            jnp.dot(sw1_ref[...], pooled, preferred_element_type=jnp.float32) + sb1_ref[...],
            0.0)
        beta = jax.nn.sigmoid(
            jnp.dot(sw2_ref[...], hid, preferred_element_type=jnp.float32) + sb2_ref[...])

        # fold the PCN hole branch into a per-channel affine:  hole value = X*a2 + c2
        a = rstd_p * std_q
        b = mu_q - mu_p * a               # T_hole = X*a + b
        a2 = 1.0 + beta * (a - 1.0)       # beta*T_hole + (1-beta)*X = X*a2 + c2
        c2 = beta * b

        # ---- residual 1x1 projection + combine + final ReLU ----
        resid = jnp.dot(wp_ref[...], xpad_ref[0, :, D:D + PC],
                        preferred_element_type=jnp.float32) + bp_ref[...]
        out = m_known * X + m_hole * (X * a2 + c2) + resid
        o_ref[...] = jnp.maximum(out, 0.0).reshape(1, Cout, PC)

    return kernel


# ----------------------------------------------------------------------------
# Glue
# ----------------------------------------------------------------------------
def interpolate_nearest(x_nchw, out_h, out_w):
    """F.interpolate(mode='nearest') on an NCHW tensor (glue, not hot path)."""
    N, C, H, W = x_nchw.shape
    if (H, W) == (out_h, out_w):
        return x_nchw
    hi = jnp.floor(jnp.arange(out_h) * (H / out_h)).astype(jnp.int32)
    wi = jnp.floor(jnp.arange(out_w) * (W / out_w)).astype(jnp.int32)
    return x_nchw[:, :, hi][:, :, :, wi]


def pcblock_forward(x_nchw, mask_nchw, p, *, K=3, pad=1, dil=1, eps=1e-5):
    """PCBlock(in_c, out_c, k=3, stride=1, pad=1, dil=1, activation='relu') forward."""
    N, Cin, H, W = x_nchw.shape
    Cout = p['w1'].shape[0]
    Cr = p['se_w1'].shape[0]
    assert pad == dil * (K - 1) // 2, "only 'same' convs supported (see TODO)"

    Wp = W + 2 * pad
    Hp = H + 2 * pad
    PC = H * Wp
    PAD_FLAT = Hp * Wp + 2 * pad

    # ---- layout plumbing (tiny, fused by XLA under jit) ----
    # padded-flat bf16 input with a 2*pad zero tail so every tap slice stays in bounds
    xpad = jnp.pad(x_nchw, ((0, 0), (0, 0), (pad, pad), (pad, pad))).reshape(N, Cin, Hp * Wp)
    xpad = jnp.pad(xpad, ((0, 0), (0, 0), (0, 2 * pad))).astype(jnp.bfloat16)

    # mask helpers in corner-flat (row stride Wp) layout, zero on the padded-width lanes
    m_res = interpolate_nearest(mask_nchw, H, W).astype(jnp.float32)         # (N,1,H,W)
    m_c = jnp.pad(m_res, ((0, 0), (0, 0), (0, 0), (0, Wp - W))).reshape(N, 1, PC)
    v_c = jnp.pad(jnp.ones((N, 1, H, W), jnp.float32),
                  ((0, 0), (0, 0), (0, 0), (0, Wp - W))).reshape(N, 1, PC)
    hole_c = v_c - m_c
    mrow = jnp.concatenate([m_c, hole_c], axis=1)                            # (N, 2, PC)
    rmat = jnp.transpose(jnp.concatenate([v_c, hole_c, m_c], axis=1), (0, 2, 1))  # (N, PC, 3)

    # weight prep: im2col weight matrices, bf16 MXU operands
    w1m = jnp.transpose(p['w1'], (0, 2, 3, 1)).reshape(Cout, K * K * Cin).astype(jnp.bfloat16)
    w2m = jnp.transpose(p['w2'], (0, 2, 3, 1)).reshape(Cout, K * K * Cout).astype(jnp.bfloat16)
    wpm = p['wp'].reshape(Cout, Cin).astype(jnp.bfloat16)
    b1 = p['b1'].reshape(Cout, 1)
    b2 = p['b2'].reshape(Cout, 1)
    bp = p['bp'].reshape(Cout, 1)
    sw1 = p['se_w1']
    sb1 = p['se_b1'].reshape(Cr, 1)
    sw2 = p['se_w2']
    sb2 = p['se_b2'].reshape(Cout, 1)

    kern = _make_pcblock_kernel(H, W, K, pad, dil, Cin, Cout, eps)
    out_flat = pl.pallas_call(
        kern,
        out_shape=jax.ShapeDtypeStruct((N, Cout, PC), jnp.float32),
        grid=(N,),
        in_specs=[
            pl.BlockSpec((1, Cin, PAD_FLAT), lambda n: (n, 0, 0)),
            pl.BlockSpec((1, 2, PC), lambda n: (n, 0, 0)),
            pl.BlockSpec((1, PC, 3), lambda n: (n, 0, 0)),
            pl.BlockSpec((Cout, K * K * Cin), lambda n: (0, 0)),
            pl.BlockSpec((Cout, 1), lambda n: (0, 0)),
            pl.BlockSpec((Cout, K * K * Cout), lambda n: (0, 0)),
            pl.BlockSpec((Cout, 1), lambda n: (0, 0)),
            pl.BlockSpec((Cout, Cin), lambda n: (0, 0)),
            pl.BlockSpec((Cout, 1), lambda n: (0, 0)),
            pl.BlockSpec((Cr, Cout), lambda n: (0, 0)),
            pl.BlockSpec((Cr, 1), lambda n: (0, 0)),
            pl.BlockSpec((Cout, Cr), lambda n: (0, 0)),
            pl.BlockSpec((Cout, 1), lambda n: (0, 0)),
        ],
        out_specs=pl.BlockSpec((1, Cout, PC), lambda n: (n, 0, 0)),
        scratch_shapes=[
            pltpu.VMEM((Cout, PAD_FLAT), jnp.bfloat16),       # conv1->conv2 padded staging
            pltpu.VMEM((K * K * Cin, PC), jnp.bfloat16),      # conv1 im2col patches
            pltpu.VMEM((K * K * Cout, PC), jnp.bfloat16),     # conv2 im2col patches
        ],
        compiler_params=pltpu.CompilerParams(dimension_semantics=("parallel",)),
    )(xpad, mrow, rmat, w1m, b1, w2m, b2, wpm, bp, sw1, sb1, sw2, sb2)

    # corner-flat -> NCHW (keep the first W columns of every padded-stride row)
    return out_flat.reshape(N, Cout, H, Wp)[:, :, :, :W]


def init_params(key, cin, cout, k, reduction=16):
    """Weights kept in PyTorch layouts: conv (O, I, Kh, Kw), 1x1 SE convs as (out, in)."""
    cr = cout // reduction
    ks = jax.random.split(key, 10)
    s = 0.1
    return dict(
        wp=s * jax.random.normal(ks[0], (cout, cin, 1, 1), jnp.float32),
        bp=s * jax.random.normal(ks[1], (cout,), jnp.float32),
        w1=s * jax.random.normal(ks[2], (cout, cin, k, k), jnp.float32),
        b1=s * jax.random.normal(ks[3], (cout,), jnp.float32),
        w2=s * jax.random.normal(ks[4], (cout, cout, k, k), jnp.float32),
        b2=s * jax.random.normal(ks[5], (cout,), jnp.float32),
        se_w1=s * jax.random.normal(ks[6], (cr, cout), jnp.float32),
        se_b1=s * jax.random.normal(ks[7], (cr,), jnp.float32),
        se_w2=s * jax.random.normal(ks[8], (cout, cr), jnp.float32),
        se_b2=s * jax.random.normal(ks[9], (cout,), jnp.float32),
    )


# ----------------------------------------------------------------------------
# Pure-JAX f32 reference (sanity check only)
# ----------------------------------------------------------------------------
def _conv_ref(x, w, b, pad, dil):
    y = jax.lax.conv_general_dilated(
        x, w, window_strides=(1, 1), padding=[(pad, pad), (pad, pad)],
        rhs_dilation=(dil, dil), dimension_numbers=('NCHW', 'OIHW', 'NCHW'),
        precision=jax.lax.Precision.HIGHEST)
    return y + b.reshape(1, -1, 1, 1)


def ref_forward(x_nchw, mask_nchw, p, K=3, pad=1, dil=1):
    eps = 1e-5
    residual = _conv_ref(x_nchw, p['wp'], p['bp'], 0, 1)
    out = jnp.maximum(_conv_ref(x_nchw, p['w1'], p['b1'], pad, dil), 0.0)
    out = _conv_ref(out, p['w2'], p['b2'], pad, dil)
    m = interpolate_nearest(mask_nchw, out.shape[2], out.shape[3])

    pooled = jnp.mean(out, axis=(2, 3))                                   # (N, C)
    hid = jnp.maximum(pooled @ p['se_w1'].T + p['se_b1'], 0.0)            # (N, Cr)
    beta = jax.nn.sigmoid(hid @ p['se_w2'].T + p['se_b2'])[:, :, None, None]

    inv = 1.0 - m
    X_p, X_q = out * inv, out * m

    def wmean(Y, T):
        return jnp.sum(Y * T, axis=(2, 3), keepdims=True) / (jnp.sum(T, axis=(2, 3), keepdims=True) + eps)

    def wstd(Y, T):
        mu = wmean(Y, T)
        return jnp.sqrt(jnp.sum((Y * T - mu) ** 2, axis=(2, 3), keepdims=True)
                        / (jnp.sum(T, axis=(2, 3), keepdims=True) + eps) + eps)

    T_feat = (X_p - wmean(X_p, inv)) / wstd(X_p, inv) * wstd(X_q, m) + wmean(X_q, m)
    context = beta * T_feat * inv + (1.0 - beta) * out * inv
    return jnp.maximum(context + out * m + residual, 0.0)


if __name__ == "__main__":
    key = jax.random.PRNGKey(0)
    k_x, k_m, k_p = jax.random.split(key, 3)

    N, Cin, Cout, H, W, K = 2, 4, 16, 16, 16, 3
    x_nchw = jax.random.normal(k_x, (N, Cin, H, W), jnp.float32)
    mask_nchw = (jax.random.uniform(k_m, (N, 1, H, W)) > 0.5).astype(jnp.float32)
    params = init_params(k_p, Cin, Cout, K)

    fwd = jax.jit(lambda x, m: pcblock_forward(x, m, params))
    out = jax.block_until_ready(fwd(x_nchw, mask_nchw))

    ref = ref_forward(x_nchw, mask_nchw, params)
    assert out.shape == (N, Cout, H, W), out.shape
    err = float(jnp.max(jnp.abs(out - ref)))
    # bf16 MXU operands (f32 accumulation) vs. a pure-f32 HIGHEST-precision reference.
    assert err < 3e-2, f"max abs err {err}"
    print("KERNEL_OK")
</pallas_src>

<mosaic_0001>
module attributes {stable_mosaic.version = 11 : i64} {
  func.func @kernel(%arg0: i32, %arg1: memref<1x4x326xbf16, #tpu.memory_space<vmem>>, %arg2: memref<1x2x288xf32, #tpu.memory_space<vmem>>, %arg3: memref<1x288x3xf32, #tpu.memory_space<vmem>>, %arg4: memref<16x36xbf16, #tpu.memory_space<vmem>>, %arg5: memref<16x1xf32, #tpu.memory_space<vmem>>, %arg6: memref<16x144xbf16, #tpu.memory_space<vmem>>, %arg7: memref<16x1xf32, #tpu.memory_space<vmem>>, %arg8: memref<16x4xbf16, #tpu.memory_space<vmem>>, %arg9: memref<16x1xf32, #tpu.memory_space<vmem>>, %arg10: memref<1x16xf32, #tpu.memory_space<vmem>>, %arg11: memref<1x1xf32, #tpu.memory_space<vmem>>, %arg12: memref<16x1xf32, #tpu.memory_space<vmem>>, %arg13: memref<16x1xf32, #tpu.memory_space<vmem>>, %arg14: memref<1x16x288xf32, #tpu.memory_space<vmem>>, %arg15: memref<16x326xbf16, #tpu.memory_space<vmem>>, %arg16: memref<36x288xbf16, #tpu.memory_space<vmem>>, %arg17: memref<144x288xbf16, #tpu.memory_space<vmem>>) attributes {dimension_semantics = [#tpu.dimension_semantics<parallel>], iteration_bounds = array<i64: 2>, scalar_prefetch = 0 : i64, scratch_operands = 3 : i64, tpu.core_type = #tpu.core_type<tc>, window_params = [{transform_indices = @transform_0, window_bounds = array<i64: 1, 4, 326>}, {transform_indices = @transform_1, window_bounds = array<i64: 1, 2, 288>}, {transform_indices = @transform_2, window_bounds = array<i64: 1, 288, 3>}, {pipeline_mode = #tpu.pipeline_mode<synchronous>, transform_indices = @transform_3, window_bounds = array<i64: 16, 36>}, {pipeline_mode = #tpu.pipeline_mode<synchronous>, transform_indices = @transform_4, window_bounds = array<i64: 16, 1>}, {pipeline_mode = #tpu.pipeline_mode<synchronous>, transform_indices = @transform_5, window_bounds = array<i64: 16, 144>}, {pipeline_mode = #tpu.pipeline_mode<synchronous>, transform_indices = @transform_6, window_bounds = array<i64: 16, 1>}, {pipeline_mode = #tpu.pipeline_mode<synchronous>, transform_indices = @transform_7, window_bounds = array<i64: 16, 4>}, {pipeline_mode = #tpu.pipeline_mode<synchronous>, transform_indices = @transform_8, window_bounds = array<i64: 16, 1>}, {pipeline_mode = #tpu.pipeline_mode<synchronous>, transform_indices = @transform_9, window_bounds = array<i64: 1, 16>}, {pipeline_mode = #tpu.pipeline_mode<synchronous>, transform_indices = @transform_10, window_bounds = array<i64: 1, 1>}, {pipeline_mode = #tpu.pipeline_mode<synchronous>, transform_indices = @transform_11, window_bounds = array<i64: 16, 1>}, {pipeline_mode = #tpu.pipeline_mode<synchronous>, transform_indices = @transform_12, window_bounds = array<i64: 16, 1>}, {transform_indices = @transform_13, window_bounds = array<i64: 1, 16, 288>}]} {
    %c0 = arith.constant 0 : index
    %c0_0 = arith.constant 0 : index
    %c0_1 = arith.constant 0 : index
    %0 = vector.load %arg2[%c0, %c0_0, %c0_1] : memref<1x2x288xf32, #tpu.memory_space<vmem>>, vector<1x2x288xf32>
    %1 = vector.shape_cast %0 : vector<1x2x288xf32> to vector<2x288xf32>
    %2 = vector.extract_strided_slice %1 {offsets = [0, 0], sizes = [1, 288], strides = [1, 1]} : vector<2x288xf32> to vector<1x288xf32>
    %3 = vector.extract_strided_slice %1 {offsets = [1, 0], sizes = [1, 288], strides = [1, 1]} : vector<2x288xf32> to vector<1x288xf32>
    %4 = arith.addf %2, %3 : vector<1x288xf32>
    %c0_2 = arith.constant 0 : index
    %c0_3 = arith.constant 0 : index
    %c0_4 = arith.constant 0 : index
    %5 = vector.load %arg1[%c0_2, %c0_3, %c0_4] : memref<1x4x326xbf16, #tpu.memory_space<vmem>>, vector<1x4x288xbf16>
    %6 = vector.shape_cast %5 : vector<1x4x288xbf16> to vector<4x288xbf16>
    %c0_5 = arith.constant 0 : index
    %c0_6 = arith.constant 0 : index
    %7 = vector.load %arg16[%c0_5, %c0_6] : memref<36x288xbf16, #tpu.memory_space<vmem>>, vector<4x288xbf16>
    tpu.vector_store %arg16[%c0_5, %c0_6], %6 {strides = array<i32>} : memref<36x288xbf16, #tpu.memory_space<vmem>>, vector<4x288xbf16>,
    %c0_7 = arith.constant 0 : index
    %c0_8 = arith.constant 0 : index
    %c1 = arith.constant 1 : index
    %8 = vector.load %arg1[%c0_7, %c0_8, %c1] : memref<1x4x326xbf16, #tpu.memory_space<vmem>>, vector<1x4x288xbf16>
    %9 = vector.shape_cast %8 : vector<1x4x288xbf16> to vector<4x288xbf16>
    %c4 = arith.constant 4 : index
    %c0_9 = arith.constant 0 : index
    %10 = vector.load %arg16[%c4, %c0_9] : memref<36x288xbf16, #tpu.memory_space<vmem>>, vector<4x288xbf16>
    tpu.vector_store %arg16[%c4, %c0_9], %9 {strides = array<i32>} : memref<36x288xbf16, #tpu.memory_space<vmem>>, vector<4x288xbf16>,
    %c0_10 = arith.constant 0 : index
    %c0_11 = arith.constant 0 : index
    %c2 = arith.constant 2 : index
    %11 = vector.load %arg1[%c0_10, %c0_11, %c2] : memref<1x4x326xbf16, #tpu.memory_space<vmem>>, vector<1x4x288xbf16>
    %12 = vector.shape_cast %11 : vector<1x4x288xbf16> to vector<4x288xbf16>
    %c8 = arith.constant 8 : index
    %c0_12 = arith.constant 0 : index
    %13 = vector.load %arg16[%c8, %c0_12] : memref<36x288xbf16, #tpu.memory_space<vmem>>, vector<4x288xbf16>
    tpu.vector_store %arg16[%c8, %c0_12], %12 {strides = array<i32>} : memref<36x288xbf16, #tpu.memory_space<vmem>>, vector<4x288xbf16>,
    %c0_13 = arith.constant 0 : index
    %c0_14 = arith.constant 0 : index
    %c18 = arith.constant 18 : index
    %14 = vector.load %arg1[%c0_13, %c0_14, %c18] : memref<1x4x326xbf16, #tpu.memory_space<vmem>>, vector<1x4x288xbf16>
    %15 = vector.shape_cast %14 : vector<1x4x288xbf16> to vector<4x288xbf16>
    %c12 = arith.constant 12 : index
    %c0_15 = arith.constant 0 : index
    %16 = vector.load %arg16[%c12, %c0_15] : memref<36x288xbf16, #tpu.memory_space<vmem>>, vector<4x288xbf16>
    tpu.vector_store %arg16[%c12, %c0_15], %15 {strides = array<i32>} : memref<36x288xbf16, #tpu.memory_space<vmem>>, vector<4x288xbf16>,
    %c0_16 = arith.constant 0 : index
    %c0_17 = arith.constant 0 : index
    %c19 = arith.constant 19 : index
    %17 = vector.load %arg1[%c0_16, %c0_17, %c19] : memref<1x4x326xbf16, #tpu.memory_space<vmem>>, vector<1x4x288xbf16>
    %18 = vector.shape_cast %17 : vector<1x4x288xbf16> to vector<4x288xbf16>
    %c16 = arith.constant 16 : index
    %c0_18 = arith.constant 0 : index
    %19 = vector.load %arg16[%c16, %c0_18] : memref<36x288xbf16, #tpu.memory_space<vmem>>, vector<4x288xbf16>
    tpu.vector_store %arg16[%c16, %c0_18], %18 {strides = array<i32>} : memref<36x288xbf16, #tpu.memory_space<vmem>>, vector<4x288xbf16>,
    %c0_19 = arith.constant 0 : index
    %c0_20 = arith.constant 0 : index
    %c20 = arith.constant 20 : index
    %20 = vector.load %arg1[%c0_19, %c0_20, %c20] : memref<1x4x326xbf16, #tpu.memory_space<vmem>>, vector<1x4x288xbf16>
    %21 = vector.shape_cast %20 : vector<1x4x288xbf16> to vector<4x288xbf16>
    %c20_21 = arith.constant 20 : index
    %c0_22 = arith.constant 0 : index
    %22 = vector.load %arg16[%c20_21, %c0_22] : memref<36x288xbf16, #tpu.memory_space<vmem>>, vector<4x288xbf16>
    tpu.vector_store %arg16[%c20_21, %c0_22], %21 {strides = array<i32>} : memref<36x288xbf16, #tpu.memory_space<vmem>>, vector<4x288xbf16>,
    %c0_23 = arith.constant 0 : index
    %c0_24 = arith.constant 0 : index
    %c36 = arith.constant 36 : index
    %23 = vector.load %arg1[%c0_23, %c0_24, %c36] : memref<1x4x326xbf16, #tpu.memory_space<vmem>>, vector<1x4x288xbf16>
    %24 = vector.shape_cast %23 : vector<1x4x288xbf16> to vector<4x288xbf16>
    %c24 = arith.constant 24 : index
    %c0_25 = arith.constant 0 : index
    %25 = vector.load %arg16[%c24, %c0_25] : memref<36x288xbf16, #tpu.memory_space<vmem>>, vector<4x288xbf16>
    tpu.vector_store %arg16[%c24, %c0_25], %24 {strides = array<i32>} : memref<36x288xbf16, #tpu.memory_space<vmem>>, vector<4x288xbf16>,
    %c0_26 = arith.constant 0 : index
    %c0_27 = arith.constant 0 : index
    %c37 = arith.constant 37 : index
    %26 = vector.load %arg1[%c0_26, %c0_27, %c37] : memref<1x4x326xbf16, #tpu.memory_space<vmem>>, vector<1x4x288xbf16>
    %27 = vector.shape_cast %26 : vector<1x4x288xbf16> to vector<4x288xbf16>
    %c28 = arith.constant 28 : index
    %c0_28 = arith.constant 0 : index
    %28 = vector.load %arg16[%c28, %c0_28] : memref<36x288xbf16, #tpu.memory_space<vmem>>, vector<4x288xbf16>
    tpu.vector_store %arg16[%c28, %c0_28], %27 {strides = array<i32>} : memref<36x288xbf16, #tpu.memory_space<vmem>>, vector<4x288xbf16>,
    %c0_29 = arith.constant 0 : index
    %c0_30 = arith.constant 0 : index
    %c38 = arith.constant 38 : index
    %29 = vector.load %arg1[%c0_29, %c0_30, %c38] : memref<1x4x326xbf16, #tpu.memory_space<vmem>>, vector<1x4x288xbf16>
    %30 = vector.shape_cast %29 : vector<1x4x288xbf16> to vector<4x288xbf16>
    %c32 = arith.constant 32 : index
    %c0_31 = arith.constant 0 : index
    %31 = vector.load %arg16[%c32, %c0_31] : memref<36x288xbf16, #tpu.memory_space<vmem>>, vector<4x288xbf16>
    tpu.vector_store %arg16[%c32, %c0_31], %30 {strides = array<i32>} : memref<36x288xbf16, #tpu.memory_space<vmem>>, vector<4x288xbf16>,
    %c0_32 = arith.constant 0 : index
    %c0_33 = arith.constant 0 : index
    %32 = vector.load %arg4[%c0_32, %c0_33] : memref<16x36xbf16, #tpu.memory_space<vmem>>, vector<16x36xbf16>
    %c0_34 = arith.constant 0 : index
    %c0_35 = arith.constant 0 : index
    %33 = vector.load %arg16[%c0_34, %c0_35] : memref<36x288xbf16, #tpu.memory_space<vmem>>, vector<36x288xbf16>
    %cst = arith.constant dense<0.000000e+00> : vector<16x288xf32>
    %34 = tpu.matmul %32, %33, %cst {dimension_numbers = #tpu.dot_dimension_numbers<[1], [0], [0], [1], [0, 0, 1, 1], [], []>} : vector<16x36xbf16>, vector<36x288xbf16>, vector<16x288xf32> -> vector<16x288xf32>
    %c0_36 = arith.constant 0 : index
    %c0_37 = arith.constant 0 : index
    %35 = vector.load %arg5[%c0_36, %c0_37] : memref<16x1xf32, #tpu.memory_space<vmem>>, vector<16x1xf32>
    %36 = vector.broadcast %35 : vector<16x1xf32> to vector<16x288xf32>
    %37 = arith.addf %34, %36 : vector<16x288xf32>
    %cst_38 = arith.constant 0.000000e+00 : f32
    %38 = vector.broadcast %cst_38 : f32 to vector<16x288xf32>
    %39 = arith.maximumf %37, %38 : vector<16x288xf32>
    %cst_39 = arith.constant 0.000000e+00 : bf16
    %40 = vector.broadcast %cst_39 : bf16 to vector<16x326xbf16>
    %c0_40 = arith.constant 0 : index
    %c0_41 = arith.constant 0 : index
    %41 = vector.load %arg15[%c0_40, %c0_41] : memref<16x326xbf16, #tpu.memory_space<vmem>>, vector<16x326xbf16>
    tpu.vector_store %arg15[%c0_40, %c0_41], %40 {strides = array<i32>} : memref<16x326xbf16, #tpu.memory_space<vmem>>, vector<16x326xbf16>,
    %42 = vector.broadcast %4 : vector<1x288xf32> to vector<16x288xf32>
    %43 = arith.mulf %39, %42 : vector<16x288xf32>
    %44 = arith.truncf %43 : vector<16x288xf32> to vector<16x288xbf16>
    %c0_42 = arith.constant 0 : index
    %c19_43 = arith.constant 19 : index
    %45 = vector.load %arg15[%c0_42, %c19_43] : memref<16x326xbf16, #tpu.memory_space<vmem>>, vector<16x288xbf16>
    tpu.vector_store %arg15[%c0_42, %c19_43], %44 {strides = array<i32>} : memref<16x326xbf16, #tpu.memory_space<vmem>>, vector<16x288xbf16>,
    %c0_44 = arith.constant 0 : index
    %c0_45 = arith.constant 0 : index
    %46 = vector.load %arg15[%c0_44, %c0_45] : memref<16x326xbf16, #tpu.memory_space<vmem>>, vector<16x288xbf16>
    %c0_46 = arith.constant 0 : index
    %c0_47 = arith.constant 0 : index
    %47 = vector.load %arg17[%c0_46, %c0_47] : memref<144x288xbf16, #tpu.memory_space<vmem>>, vector<16x288xbf16>
    tpu.vector_store %arg17[%c0_46, %c0_47], %46 {strides = array<i32>} : memref<144x288xbf16, #tpu.memory_space<vmem>>, vector<16x288xbf16>,
    %c0_48 = arith.constant 0 : index
    %c1_49 = arith.constant 1 : index
    %48 = vector.load %arg15[%c0_48, %c1_49] : memref<16x326xbf16, #tpu.memory_space<vmem>>, vector<16x288xbf16>
    %c16_50 = arith.constant 16 : index
    %c0_51 = arith.constant 0 : index
    %49 = vector.load %arg17[%c16_50, %c0_51] : memref<144x288xbf16, #tpu.memory_space<vmem>>, vector<16x288xbf16>
    tpu.vector_store %arg17[%c16_50, %c0_51], %48 {strides = array<i32>} : memref<144x288xbf16, #tpu.memory_space<vmem>>, vector<16x288xbf16>,
    %c0_52 = arith.constant 0 : index
    %c2_53 = arith.constant 2 : index
    %50 = vector.load %arg15[%c0_52, %c2_53] : memref<16x326xbf16, #tpu.memory_space<vmem>>, vector<16x288xbf16>
    %c32_54 = arith.constant 32 : index
    %c0_55 = arith.constant 0 : index
    %51 = vector.load %arg17[%c32_54, %c0_55] : memref<144x288xbf16, #tpu.memory_space<vmem>>, vector<16x288xbf16>
    tpu.vector_store %arg17[%c32_54, %c0_55], %50 {strides = array<i32>} : memref<144x288xbf16, #tpu.memory_space<vmem>>, vector<16x288xbf16>,
    %c0_56 = arith.constant 0 : index
    %c18_57 = arith.constant 18 : index
    %52 = vector.load %arg15[%c0_56, %c18_57] : memref<16x326xbf16, #tpu.memory_space<vmem>>, vector<16x288xbf16>
    %c48 = arith.constant 48 : index
    %c0_58 = arith.constant 0 : index
    %53 = vector.load %arg17[%c48, %c0_58] : memref<144x288xbf16, #tpu.memory_space<vmem>>, vector<16x288xbf16>
    tpu.vector_store %arg17[%c48, %c0_58], %52 {strides = array<i32>} : memref<144x288xbf16, #tpu.memory_space<vmem>>, vector<16x288xbf16>,
    %c0_59 = arith.constant 0 : index
    %c19_60 = arith.constant 19 : index
    %54 = vector.load %arg15[%c0_59, %c19_60] : memref<16x326xbf16, #tpu.memory_space<vmem>>, vector<16x288xbf16>
    %c64 = arith.constant 64 : index
    %c0_61 = arith.constant 0 : index
    %55 = vector.load %arg17[%c64, %c0_61] : memref<144x288xbf16, #tpu.memory_space<vmem>>, vector<16x288xbf16>
    tpu.vector_store %arg17[%c64, %c0_61], %54 {strides = array<i32>} : memref<144x288xbf16, #tpu.memory_space<vmem>>, vector<16x288xbf16>,
    %c0_62 = arith.constant 0 : index
    %c20_63 = arith.constant 20 : index
    %56 = vector.load %arg15[%c0_62, %c20_63] : memref<16x326xbf16, #tpu.memory_space<vmem>>, vector<16x288xbf16>
    %c80 = arith.constant 80 : index
    %c0_64 = arith.constant 0 : index
    %57 = vector.load %arg17[%c80, %c0_64] : memref<144x288xbf16, #tpu.memory_space<vmem>>, vector<16x288xbf16>
    tpu.vector_store %arg17[%c80, %c0_64], %56 {strides = array<i32>} : memref<144x288xbf16, #tpu.memory_space<vmem>>, vector<16x288xbf16>,
    %c0_65 = arith.constant 0 : index
    %c36_66 = arith.constant 36 : index
    %58 = vector.load %arg15[%c0_65, %c36_66] : memref<16x326xbf16, #tpu.memory_space<vmem>>, vector<16x288xbf16>
    %c96 = arith.constant 96 : index
    %c0_67 = arith.constant 0 : index
    %59 = vector.load %arg17[%c96, %c0_67] : memref<144x288xbf16, #tpu.memory_space<vmem>>, vector<16x288xbf16>
    tpu.vector_store %arg17[%c96, %c0_67], %58 {strides = array<i32>} : memref<144x288xbf16, #tpu.memory_space<vmem>>, vector<16x288xbf16>,
    %c0_68 = arith.constant 0 : index
    %c37_69 = arith.constant 37 : index
    %60 = vector.load %arg15[%c0_68, %c37_69] : memref<16x326xbf16, #tpu.memory_space<vmem>>, vector<16x288xbf16>
    %c112 = arith.constant 112 : index
    %c0_70 = arith.constant 0 : index
    %61 = vector.load %arg17[%c112, %c0_70] : memref<144x288xbf16, #tpu.memory_space<vmem>>, vector<16x288xbf16>
    tpu.vector_store %arg17[%c112, %c0_70], %60 {strides = array<i32>} : memref<144x288xbf16, #tpu.memory_space<vmem>>, vector<16x288xbf16>,
    %c0_71 = arith.constant 0 : index
    %c38_72 = arith.constant 38 : index
    %62 = vector.load %arg15[%c0_71, %c38_72] : memref<16x326xbf16, #tpu.memory_space<vmem>>, vector<16x288xbf16>
    %c128 = arith.constant 128 : index
    %c0_73 = arith.constant 0 : index
    %63 = vector.load %arg17[%c128, %c0_73] : memref<144x288xbf16, #tpu.memory_space<vmem>>, vector<16x288xbf16>
    tpu.vector_store %arg17[%c128, %c0_73], %62 {strides = array<i32>} : memref<144x288xbf16, #tpu.memory_space<vmem>>, vector<16x288xbf16>,
    %c0_74 = arith.constant 0 : index
    %c0_75 = arith.constant 0 : index
    %64 = vector.load %arg6[%c0_74, %c0_75] : memref<16x144xbf16, #tpu.memory_space<vmem>>, vector<16x144xbf16>
    %c0_76 = arith.constant 0 : index
    %c0_77 = arith.constant 0 : index
    %65 = vector.load %arg17[%c0_76, %c0_77] : memref<144x288xbf16, #tpu.memory_space<vmem>>, vector<144x288xbf16>
    %cst_78 = arith.constant dense<0.000000e+00> : vector<16x288xf32>
    %66 = tpu.matmul %64, %65, %cst_78 {dimension_numbers = #tpu.dot_dimension_numbers<[1], [0], [0], [1], [0, 0, 1, 1], [], []>} : vector<16x144xbf16>, vector<144x288xbf16>, vector<16x288xf32> -> vector<16x288xf32>
    %c0_79 = arith.constant 0 : index
    %c0_80 = arith.constant 0 : index
    %67 = vector.load %arg7[%c0_79, %c0_80] : memref<16x1xf32, #tpu.memory_space<vmem>>, vector<16x1xf32>
    %68 = vector.broadcast %67 : vector<16x1xf32> to vector<16x288xf32>
    %69 = arith.addf %66, %68 : vector<16x288xf32>
    %c0_81 = arith.constant 0 : index
    %c0_82 = arith.constant 0 : index
    %c0_83 = arith.constant 0 : index
    %70 = vector.load %arg3[%c0_81, %c0_82, %c0_83] : memref<1x288x3xf32, #tpu.memory_space<vmem>>, vector<1x288x3xf32>
    %71 = vector.shape_cast %70 : vector<1x288x3xf32> to vector<288x3xf32>
    %cst_84 = arith.constant dense<0.000000e+00> : vector<16x3xf32>
    %72 = tpu.matmul %69, %71, %cst_84 {dimension_numbers = #tpu.dot_dimension_numbers<[1], [0], [0], [1], [0, 0, 1, 1], [], []>} : vector<16x288xf32>, vector<288x3xf32>, vector<16x3xf32> -> vector<16x3xf32>
    %73 = arith.mulf %69, %69 : vector<16x288xf32>
    %cst_85 = arith.constant dense<0.000000e+00> : vector<16x3xf32>
    %74 = tpu.matmul %73, %71, %cst_85 {dimension_numbers = #tpu.dot_dimension_numbers<[1], [0], [0], [1], [0, 0, 1, 1], [], []>} : vector<16x288xf32>, vector<288x3xf32>, vector<16x3xf32> -> vector<16x3xf32>
    %75 = vector.extract_strided_slice %72 {offsets = [0, 0], sizes = [16, 1], strides = [1, 1]} : vector<16x3xf32> to vector<16x1xf32>
    %76 = vector.extract_strided_slice %72 {offsets = [0, 1], sizes = [16, 1], strides = [1, 1]} : vector<16x3xf32> to vector<16x1xf32>
    %77 = vector.extract_strided_slice %72 {offsets = [0, 2], sizes = [16, 1], strides = [1, 1]} : vector<16x3xf32> to vector<16x1xf32>
    %78 = vector.extract_strided_slice %74 {offsets = [0, 1], sizes = [16, 1], strides = [1, 1]} : vector<16x3xf32> to vector<16x1xf32>
    %79 = vector.extract_strided_slice %74 {offsets = [0, 2], sizes = [16, 1], strides = [1, 1]} : vector<16x3xf32> to vector<16x1xf32>
    %cst_86 = arith.constant dense<0.000000e+00> : vector<1xf32>
    %80 = vector.multi_reduction <add>, %2, %cst_86 [1] : vector<1x288xf32> to vector<1xf32>
    %81 = vector.shape_cast %80 : vector<1xf32> to vector<1x1xf32>
    %cst_87 = arith.constant 2.560000e+02 : f32
    %82 = vector.broadcast %cst_87 : f32 to vector<1x1xf32>
    %83 = arith.subf %82, %81 : vector<1x1xf32>
    %cst_88 = arith.constant 9.99999974E-6 : f32
    %84 = vector.broadcast %cst_88 : f32 to vector<1x1xf32>
    %85 = arith.addf %83, %84 : vector<1x1xf32>
    %cst_89 = arith.constant 1.000000e+00 : f32
    %86 = vector.broadcast %cst_89 : f32 to vector<1x1xf32>
    %87 = arith.divf %86, %85 : vector<1x1xf32>
    %cst_90 = arith.constant 9.99999974E-6 : f32
    %88 = vector.broadcast %cst_90 : f32 to vector<1x1xf32>
    %89 = arith.addf %81, %88 : vector<1x1xf32>
    %cst_91 = arith.constant 1.000000e+00 : f32
    %90 = vector.broadcast %cst_91 : f32 to vector<1x1xf32>
    %91 = arith.divf %90, %89 : vector<1x1xf32>
    %92 = vector.broadcast %87 : vector<1x1xf32> to vector<16x1xf32>
    %93 = arith.mulf %76, %92 : vector<16x1xf32>
    %94 = vector.broadcast %91 : vector<1x1xf32> to vector<16x1xf32>
    %95 = arith.mulf %77, %94 : vector<16x1xf32>
    %cst_92 = arith.constant 2.000000e+00 : f32
    %96 = vector.broadcast %cst_92 : f32 to vector<16x1xf32>
    %97 = arith.mulf %96, %93 : vector<16x1xf32>
    %98 = arith.mulf %97, %76 : vector<16x1xf32>
    %99 = arith.subf %78, %98 : vector<16x1xf32>
    %cst_93 = arith.constant 2.560000e+02 : f32
    %100 = vector.broadcast %cst_93 : f32 to vector<16x1xf32>
    %101 = arith.mulf %100, %93 : vector<16x1xf32>
    %102 = arith.mulf %101, %93 : vector<16x1xf32>
    %103 = arith.addf %99, %102 : vector<16x1xf32>
    %104 = vector.broadcast %87 : vector<1x1xf32> to vector<16x1xf32>
    %105 = arith.mulf %103, %104 : vector<16x1xf32>
    %cst_94 = arith.constant 2.000000e+00 : f32
    %106 = vector.broadcast %cst_94 : f32 to vector<16x1xf32>
    %107 = arith.mulf %106, %95 : vector<16x1xf32>
    %108 = arith.mulf %107, %77 : vector<16x1xf32>
    %109 = arith.subf %79, %108 : vector<16x1xf32>
    %cst_95 = arith.constant 2.560000e+02 : f32
    %110 = vector.broadcast %cst_95 : f32 to vector<16x1xf32>
    %111 = arith.mulf %110, %95 : vector<16x1xf32>
    %112 = arith.mulf %111, %95 : vector<16x1xf32>
    %113 = arith.addf %109, %112 : vector<16x1xf32>
    %114 = vector.broadcast %91 : vector<1x1xf32> to vector<16x1xf32>
    %115 = arith.mulf %113, %114 : vector<16x1xf32>
    %cst_96 = arith.constant 9.99999974E-6 : f32
    %116 = vector.broadcast %cst_96 : f32 to vector<16x1xf32>
    %117 = arith.addf %105, %116 : vector<16x1xf32>
    %118 = math.rsqrt %117 : vector<16x1xf32>
    %cst_97 = arith.constant 9.99999974E-6 : f32
    %119 = vector.broadcast %cst_97 : f32 to vector<16x1xf32>
    %120 = arith.addf %115, %119 : vector<16x1xf32>
    %121 = math.sqrt %120 : vector<16x1xf32>
    %cst_98 = arith.constant 3.906250e-03 : f32
    %122 = vector.broadcast %cst_98 : f32 to vector<16x1xf32>
    %123 = arith.mulf %75, %122 : vector<16x1xf32>
    %c0_99 = arith.constant 0 : index
    %c0_100 = arith.constant 0 : index
    %124 = vector.load %arg10[%c0_99, %c0_100] : memref<1x16xf32, #tpu.memory_space<vmem>>, vector<1x16xf32>
    %cst_101 = arith.constant dense<0.000000e+00> : vector<1x1xf32>
    %125 = tpu.matmul %124, %123, %cst_101 {dimension_numbers = #tpu.dot_dimension_numbers<[1], [0], [0], [1], [0, 0, 1, 1], [], []>} : vector<1x16xf32>, vector<16x1xf32>, vector<1x1xf32> -> vector<1x1xf32>
    %c0_102 = arith.constant 0 : index
    %c0_103 = arith.constant 0 : index
    %126 = vector.load %arg11[%c0_102, %c0_103] : memref<1x1xf32, #tpu.memory_space<vmem>>, vector<1x1xf32>
    %127 = arith.addf %125, %126 : vector<1x1xf32>
    %cst_104 = arith.constant 0.000000e+00 : f32
    %128 = vector.broadcast %cst_104 : f32 to vector<1x1xf32>
    %129 = arith.maximumf %127, %128 : vector<1x1xf32>
    %c0_105 = arith.constant 0 : index
    %c0_106 = arith.constant 0 : index
    %130 = vector.load %arg12[%c0_105, %c0_106] : memref<16x1xf32, #tpu.memory_space<vmem>>, vector<16x1xf32>
    %cst_107 = arith.constant dense<0.000000e+00> : vector<16x1xf32>
    %131 = tpu.matmul %130, %129, %cst_107 {dimension_numbers = #tpu.dot_dimension_numbers<[1], [0], [0], [1], [0, 0, 1, 1], [], []>} : vector<16x1xf32>, vector<1x1xf32>, vector<16x1xf32> -> vector<16x1xf32>
    %c0_108 = arith.constant 0 : index
    %c0_109 = arith.constant 0 : index
    %132 = vector.load %arg13[%c0_108, %c0_109] : memref<16x1xf32, #tpu.memory_space<vmem>>, vector<16x1xf32>
    %133 = arith.addf %131, %132 : vector<16x1xf32>
    %134 = arith.negf %133 : vector<16x1xf32>
    %135 = math.exp %134 : vector<16x1xf32>
    %cst_110 = arith.constant 1.000000e+00 : f32
    %136 = vector.broadcast %cst_110 : f32 to vector<16x1xf32>
    %137 = arith.addf %136, %135 : vector<16x1xf32>
    %138 = arith.divf %136, %137 : vector<16x1xf32>
    %139 = arith.mulf %118, %121 : vector<16x1xf32>
    %140 = arith.mulf %93, %139 : vector<16x1xf32>
    %141 = arith.subf %95, %140 : vector<16x1xf32>
    %cst_111 = arith.constant 1.000000e+00 : f32
    %142 = vector.broadcast %cst_111 : f32 to vector<16x1xf32>
    %143 = arith.subf %139, %142 : vector<16x1xf32>
    %144 = arith.mulf %138, %143 : vector<16x1xf32>
    %cst_112 = arith.constant 1.000000e+00 : f32
    %145 = vector.broadcast %cst_112 : f32 to vector<16x1xf32>
    %146 = arith.addf %145, %144 : vector<16x1xf32>
    %147 = arith.mulf %138, %141 : vector<16x1xf32>
    %c0_113 = arith.constant 0 : index
    %c0_114 = arith.constant 0 : index
    %148 = vector.load %arg8[%c0_113, %c0_114] : memref<16x4xbf16, #tpu.memory_space<vmem>>, vector<16x4xbf16>
    %c0_115 = arith.constant 0 : index
    %c0_116 = arith.constant 0 : index
    %c19_117 = arith.constant 19 : index
    %149 = vector.load %arg1[%c0_115, %c0_116, %c19_117] : memref<1x4x326xbf16, #tpu.memory_space<vmem>>, vector<1x4x288xbf16>
    %150 = vector.shape_cast %149 : vector<1x4x288xbf16> to vector<4x288xbf16>
    %cst_118 = arith.constant dense<0.000000e+00> : vector<16x288xf32>
    %151 = tpu.matmul %148, %150, %cst_118 {dimension_numbers = #tpu.dot_dimension_numbers<[1], [0], [0], [1], [0, 0, 1, 1], [], []>} : vector<16x4xbf16>, vector<4x288xbf16>, vector<16x288xf32> -> vector<16x288xf32>
    %c0_119 = arith.constant 0 : index
    %c0_120 = arith.constant 0 : index
    %152 = vector.load %arg9[%c0_119, %c0_120] : memref<16x1xf32, #tpu.memory_space<vmem>>, vector<16x1xf32>
    %153 = vector.broadcast %152 : vector<16x1xf32> to vector<16x288xf32>
    %154 = arith.addf %151, %153 : vector<16x288xf32>
    %155 = vector.broadcast %2 : vector<1x288xf32> to vector<16x288xf32>
    %156 = arith.mulf %155, %69 : vector<16x288xf32>
    %157 = vector.broadcast %146 : vector<16x1xf32> to vector<16x288xf32>
    %158 = arith.mulf %69, %157 : vector<16x288xf32>
    %159 = vector.broadcast %147 : vector<16x1xf32> to vector<16x288xf32>
    %160 = arith.addf %158, %159 : vector<16x288xf32>
    %161 = vector.broadcast %3 : vector<1x288xf32> to vector<16x288xf32>
    %162 = arith.mulf %161, %160 : vector<16x288xf32>
    %163 = arith.addf %156, %162 : vector<16x288xf32>
    %164 = arith.addf %163, %154 : vector<16x288xf32>
    %cst_121 = arith.constant 0.000000e+00 : f32
    %165 = vector.broadcast %cst_121 : f32 to vector<16x288xf32>
    %166 = arith.maximumf %164, %165 : vector<16x288xf32>
    %167 = vector.shape_cast %166 : vector<16x288xf32> to vector<1x16x288xf32>
    %c0_122 = arith.constant 0 : index
    %c0_123 = arith.constant 0 : index
    %c0_124 = arith.constant 0 : index
    %168 = vector.load %arg14[%c0_122, %c0_123, %c0_124] : memref<1x16x288xf32, #tpu.memory_space<vmem>>, vector<1x16x288xf32>
    tpu.vector_store %arg14[%c0_122, %c0_123, %c0_124], %167 {strides = array<i32>} : memref<1x16x288xf32, #tpu.memory_space<vmem>>, vector<1x16x288xf32>,
    return
  }
  func.func @transform_0(%arg0: i32) -> (i32, i32, i32) {
    %c0_i32 = arith.constant 0 : i32
    %c0_i32_0 = arith.constant 0 : i32
    %c0_i32_1 = arith.constant 0 : i32
    return %arg0, %c0_i32, %c0_i32_0 : i32, i32, i32
  }
  func.func @transform_1(%arg0: i32) -> (i32, i32, i32) {
    %c0_i32 = arith.constant 0 : i32
    %c0_i32_0 = arith.constant 0 : i32
    %c0_i32_1 = arith.constant 0 : i32
    return %arg0, %c0_i32, %c0_i32_0 : i32, i32, i32
  }
  func.func @transform_2(%arg0: i32) -> (i32, i32, i32) {
    %c0_i32 = arith.constant 0 : i32
    %c0_i32_0 = arith.constant 0 : i32
    %c0_i32_1 = arith.constant 0 : i32
    return %arg0, %c0_i32, %c0_i32_0 : i32, i32, i32
  }
  func.func @transform_3(%arg0: i32) -> (i32, i32) {
    %c0_i32 = arith.constant 0 : i32
    %c0_i32_0 = arith.constant 0 : i32
    %c0_i32_1 = arith.constant 0 : i32
    return %c0_i32, %c0_i32_0 : i32, i32
  }
  func.func @transform_4(%arg0: i32) -> (i32, i32) {
    %c0_i32 = arith.constant 0 : i32
    %c0_i32_0 = arith.constant 0 : i32
    %c0_i32_1 = arith.constant 0 : i32
    return %c0_i32, %c0_i32_0 : i32, i32
  }
  func.func @transform_5(%arg0: i32) -> (i32, i32) {
    %c0_i32 = arith.constant 0 : i32
    %c0_i32_0 = arith.constant 0 : i32
    %c0_i32_1 = arith.constant 0 : i32
    return %c0_i32, %c0_i32_0 : i32, i32
  }
  func.func @transform_6(%arg0: i32) -> (i32, i32) {
    %c0_i32 = arith.constant 0 : i32
    %c0_i32_0 = arith.constant 0 : i32
    %c0_i32_1 = arith.constant 0 : i32
    return %c0_i32, %c0_i32_0 : i32, i32
  }
  func.func @transform_7(%arg0: i32) -> (i32, i32) {
    %c0_i32 = arith.constant 0 : i32
    %c0_i32_0 = arith.constant 0 : i32
    %c0_i32_1 = arith.constant 0 : i32
    return %c0_i32, %c0_i32_0 : i32, i32
  }
  func.func @transform_8(%arg0: i32) -> (i32, i32) {
    %c0_i32 = arith.constant 0 : i32
    %c0_i32_0 = arith.constant 0 : i32
    %c0_i32_1 = arith.constant 0 : i32
    return %c0_i32, %c0_i32_0 : i32, i32
  }
  func.func @transform_9(%arg0: i32) -> (i32, i32) {
    %c0_i32 = arith.constant 0 : i32
    %c0_i32_0 = arith.constant 0 : i32
    %c0_i32_1 = arith.constant 0 : i32
    return %c0_i32, %c0_i32_0 : i32, i32
  }
  func.func @transform_10(%arg0: i32) -> (i32, i32) {
    %c0_i32 = arith.constant 0 : i32
    %c0_i32_0 = arith.constant 0 : i32
    %c0_i32_1 = arith.constant 0 : i32
    return %c0_i32, %c0_i32_0 : i32, i32
  }
  func.func @transform_11(%arg0: i32) -> (i32, i32) {
    %c0_i32 = arith.constant 0 : i32
    %c0_i32_0 = arith.constant 0 : i32
    %c0_i32_1 = arith.constant 0 : i32
    return %c0_i32, %c0_i32_0 : i32, i32
  }
  func.func @transform_12(%arg0: i32) -> (i32, i32) {
    %c0_i32 = arith.constant 0 : i32
    %c0_i32_0 = arith.constant 0 : i32
    %c0_i32_1 = arith.constant 0 : i32
    return %c0_i32, %c0_i32_0 : i32, i32
  }
  func.func @transform_13(%arg0: i32) -> (i32, i32, i32) {
    %c0_i32 = arith.constant 0 : i32
    %c0_i32_0 = arith.constant 0 : i32
    %c0_i32_1 = arith.constant 0 : i32
    return %arg0, %c0_i32, %c0_i32_0 : i32, i32, i32
  }
}

</mosaic_0001>

<bundles_post_ra>
// kernel: _lambda_.1
= control target key start
LH: loop header
LB: loop body
LE: loop exit
PB: predicated region body
PF: predicated region fallthrough
CT: control target
= control target key end

     0   :  { %s2740_s27 = smov 0   ;;  %s3254_s0 = inlined_call_operand.vmem [shape: bf16[2,4,326], index: 0, kind: input, shape index: {}]   ;;  %s3255_s1 = inlined_call_operand.vmem [shape: f32[2,2,288], index: 1, kind: input, shape index: {}]   ;;  %s3256_s2 = inlined_call_operand.vmem [shape: f32[2,288,3], index: 2, kind: input, shape index: {}]   ;;  %s3257_s3 = inlined_call_operand.vmem [shape: bf16[16,36], index: 3, kind: input, shape index: {}]   ;;  %s3258_s4 = inlined_call_operand.vmem [shape: f32[16,1], index: 4, kind: input, shape index: {}]   ;;  %s3259_s5 = inlined_call_operand.vmem [shape: bf16[16,144], index: 5, kind: input, shape index: {}]   ;;  %s3260_s6 = inlined_call_operand.vmem [shape: f32[16,1], index: 6, kind: input, shape index: {}]   ;;  %s3261_s7 = inlined_call_operand.vmem [shape: bf16[16,4], index: 7, kind: input, shape index: {}]   ;;  %s3262_s8 = inlined_call_operand.vmem [shape: f32[16,1], index: 8, kind: input, shape index: {}]   ;;  %s3263_s9 = inlined_call_operand.vmem [shape: f32[1,16], index: 9, kind: input, shape index: {}]   ;;  %s3264_s10 = inlined_call_operand.<no memory space> [shape: f32[1,1], index: 10, kind: input, shape index: {}]   ;;  %s3265_s11 = inlined_call_operand.vmem [shape: f32[16,1], index: 11, kind: input, shape index: {}]   ;;  %s3266_s12 = inlined_call_operand.vmem [shape: f32[16,1], index: 12, kind: input, shape index: {}]   ;;  %s3267_s13 = inlined_call_operand.vmem [shape: f32[2,16,288], index: 13, kind: output, shape index: {}]  }
   0x1   :  { %v18_v0 = vstv %s3264_s10 }
   0x2   :  { %19 = vst [vmem:[#allocation5] sm:$0x1] %v18_v0 }
   0x3 LB: > { %s2291_s28 = sadd.s32 4294967295, %s2650_s27   ;;  %p2295_p0 = scmp.ge.s32.totalorder %s2650_s27, 1  ;;  %s2650_s27 = sphi %s2740_s27, %s25_s27  }
   0x4   : > { %p409_p1 = scmp.lt.s32.totalorder %s2650_s27, 3 }
   0x6   : > { %p410_p2 = pnand %p2295_p0, %p409_p1 }
   0x7   : > { %p463_p3 = scmp.lt.s32.totalorder (!%p410_p2), %s2291_s28, 1  ;;  %v503_v1 = vlaneseq (!%p410_p2)  ;;  %v2652_v2 = vmov (!%p410_p2), 1983009808   ;;  %s2653_s15 = smov (!%p410_p2), 126   ;;  %vm510_vm0 = vcmask (!%p410_p2), 254976   ;;  %v2657_v25 = vmov (!%p410_p2), 0.0  }
   0x8   : > { %413 = sbr.rel (%p410_p2) target bundleno = 1751 (0x6d7), region = 72  ;;  %v501_v3 = vunpack.c.l.s4 (!%p410_p2), %v2652_v2  ;;  %s2654_s16 = smov (!%p410_p2), 127   ;;  %2437 = vmatprep.subr.bf16.mxu1 (!%p410_p2), %v2657_v25  ;;  %v2662_v43 = vmov (!%p410_p2), 0   ;;  %vm2663_vm1 = vmmov (!%p410_p2), 0   ;;  %v766_v44 = vld [vmem:[%s3258_s4] sm:$0xff] (!%p410_p2)  ;;  %v767_v45 = vld [vmem:[%s3258_s4 + $0x8] sm:$0xff] (!%p410_p2) }
   0x9   : > { %v2750_v4 = vshrl.u32 (!%p410_p2), %v503_v1, 7  ;;  %s2655_s17 = smov (!%p410_p2), 110   ;;  %s2656_s18 = smov (!%p410_p2), 109   ;;  %869 = vmatprep.mubr.bf16.mxu0 (!%p410_p2), %v2662_v43  ;;  %927 = vst [vmem:[#allocation2] sm:$0xff] (!%p410_p2), %v2662_v43  ;;  %2443 = vmatprep.mubr.msk.bf16.mxu1 (!%p410_p2), %vm2663_vm1, %v2657_v25  ;;  %vm542_vm2 = vcmask (!%p410_p2), 257026   ;;  %vm535_vm3 = vcmask (!%p410_p2), 1043456  }
   0xa   : > { %v502_v5 = vunpack.c.0.s8 (!%p410_p2), %v501_v3  ;;  %s2658_s19 = smov (!%p410_p2), 108   ;;  %s2659_s20 = smov (!%p410_p2), 92   ;;  %2596 = vset.pattern.permute.xlu0 (!%p410_p2), %v2662_v43  ;;  %2597 = vset.pattern.permute.xlu1 (!%p410_p2), %v2662_v43  ;;  %vm568_vm4 = vcmask (!%p410_p2), 1031168   ;;  %vm537_vm5 = vcmask (!%p410_p2), 1039360   ;;  %vm628_vm6 = vcmask (!%p410_p2), 891904  }
   0xb   : > { %s2660_s21 = smov (!%p410_p2), 91   ;;  %s2661_s22 = smov (!%p410_p2), 90   ;;  %vm598_vm7 = vcmask (!%p410_p2), 900096   ;;  %vm658_vm8 = vcmask (!%p410_p2), 883712   ;;  %vm688_vm9 = vcmask (!%p410_p2), 752640   ;;  %vm718_vm10 = vcmask (!%p410_p2), 744448  }
   0xc   : > { %v2754_v6 = vsub.s32 (!%p410_p2), %v502_v5, %v2750_v4  ;;  %vm748_vm11 = vcmask (!%p410_p2), 736256   ;;  %vm827_vm12 = vcmask (!%p410_p2), 1041408   ;;  %vm823_vm13 = vcmask (!%p410_p2), 293888  }
   0xd   : > { %vm929_vm14 = vcmask (!%p410_p2), 572416   ;;  %vm983_vm15 = vcmask (!%p410_p2), 1047704  }
   0xe   : > { %930 = vst.msk [vmem:[#allocation2 + $0x10] sm:$0xff] (!%p410_p2), %vm929_vm14, %v2662_v43 }
   0xf   : > { %s3269_s28 = smov (!%p463_p3, %s2291_s28), 1 }
  0x10   : > { %s2570_s10 = smul.u32 6, %s3269_s28 }
  0x12   : > { %s2761_s14 = scalar_lea.vmem %s3254_s0, %s2570_s10  ;;  %s2857_s25 = scalar_lea.vmem %s3255_s1, %s2570_s10 }
  0x13   : > { %v544_v7 = vld [vmem:[%s2761_s14] sm:$0x3f]  ;;  %s2664_s10 = smov 19  }
  0x14   : > { %v512_v8 = vld [vmem:[%s2761_s14] sm:$0x3f]  ;;  %v553_v10 = vrot.slane %v544_v7, %v2754_v6  ;;  %v546_v13 = vcombine.high %v544_v7, %v544_v7 }
  0x15   : > { %v574_v9 = vld [vmem:[%s2761_s14] sm:$0x3f]  ;;  %v528_v11 = vrot.slane %v512_v8, %v2754_v6  ;;  %v514_v15 = vcombine.low %v512_v8, %v512_v8 }
  0x16   : > { %v604_v12 = vld [vmem:[%s2761_s14] sm:$0x3f]  ;;  %561 = vrot.lane.b32.xlu1 %v553_v10, %s2653_s15  ;;  %v590_v16 = vrot.slane %v574_v9, %v2754_v6  ;;  %v560_v20 = vrot.slane %v546_v13, %v2754_v6  ;;  %v576_v22 = vcombine.low %v574_v9, %v574_v9 }
  0x17   : > { %v490_v14 = vld [vmem:[%s2761_s14] sm:$0x3f]  ;;  %531 = vrot.lane.b32.xlu0 %v528_v11, %s2654_s16  ;;  %v613_v17 = vrot.slane %v604_v12, %v2754_v6  ;;  %v606_v18 = vcombine.high %v604_v12, %v604_v12  ;;  %v521_v21 = vrot.slane %v514_v15, %v2754_v6 }
  0x18   : > { %2301 = vst.sshfl [vmem:[#allocation3] sm:$0xf pattern:$0x76325410] %v490_v14  ;;  %v492_v19 = vcombine.high %v490_v14, %v490_v14  ;;  %v634_v23 = vld [vmem:[%s2761_s14] sm:$0x3f]  ;;  %v583_v27 = vrot.slane %v576_v22, %v2754_v6 }
  0x19   : > { %v620_v26 = vrot.slane %v606_v18, %v2754_v6  ;;  %v636_v28 = vcombine.low %v634_v23, %v634_v23  ;;  %v664_v29 = vld [vmem:[%s2761_s14] sm:$0x3f]  ;;  %v650_v30 = vrot.slane %v634_v23, %v2754_v6 }
  0x1a   : > { %593 = vrot.lane.b32.xlu1 %v590_v16, %s2655_s17  ;;  %v506_v24 = vrot.slane %v492_v19, %v2754_v6  ;;  %v666_v32 = vcombine.high %v664_v29, %v664_v29  ;;  %v694_v33 = vld [vmem:[%s2761_s14] sm:$0x3f]  ;;  %v673_v35 = vrot.slane %v664_v29, %v2754_v6 }
  0x1b   : > { %621 = vrot.lane.b32.xlu0 %v613_v17, %s2656_s18  ;;  %v643_v31 = vrot.slane %v636_v28, %v2754_v6  ;;  %v696_v36 = vcombine.low %v694_v33, %v694_v33  ;;  %v724_v37 = vld [vmem:[%s2761_s14] sm:$0x3f]  ;;  %v710_v38 = vrot.slane %v694_v33, %v2754_v6 }
  0x1c   : > { %511 = vst.msk [vmem:[#allocation3 + $0x8] sm:$0x3] %vm510_vm0, %v506_v24  ;;  %v680_v34 = vrot.slane %v666_v32, %v2754_v6  ;;  %v726_v40 = vcombine.high %v724_v37, %v724_v37  ;;  %v733_v42 = vrot.slane %v724_v37, %v2754_v6 }
  0x1d   : > { %v703_v39 = vrot.slane %v696_v36, %v2754_v6 }
  0x1e   : > { %563 = vrot.lane.b32.xlu1 %v560_v20, %s2653_s15  ;;  %v740_v41 = vrot.slane %v726_v40, %v2754_v6 }
  0x1f   : > { %529 = vrot.lane.b32.xlu0 %v521_v21, %s2654_s16 }
  0x22   : > { %623 = vrot.lane.b32.xlu1 %v620_v26, %s2656_s18 }
  0x23   : > { %591 = vrot.lane.b32.xlu0 %v583_v27, %s2655_s17 }
  0x26   : > { %653 = vrot.lane.b32.xlu1 %v650_v30, %s2658_s19 }
  0x27   : > { %651 = vrot.lane.b32.xlu0 %v643_v31, %s2658_s19 }
  0x2a   : > { %683 = vrot.lane.b32.xlu1 %v680_v34, %s2659_s20 }
  0x2b   : > { %681 = vrot.lane.b32.xlu0 %v673_v35, %s2659_s20 }
  0x2e   : > { %713 = vrot.lane.b32.xlu1 %v710_v38, %s2660_s21 }
  0x2f   : > { %711 = vrot.lane.b32.xlu0 %v703_v39, %s2660_s21 }
  0x32   : > { %743 = vrot.lane.b32.xlu1 %v740_v41, %s2661_s22 }
  0x33   : > { %741 = vrot.lane.b32.xlu0 %v733_v42, %s2661_s22 }
  0x36   : > { %775 = vperm.xlu1 %2597, %v767_v45  }
  0x37   : > { %770 = vperm.xlu0 %2596, %v766_v44   ;;  %v2617_v44 = vld [vmem:[%s3257_s3] sm:$0xff]  }
  0x88   : > { %v562_v46 = vpop.permute.xlu1 %561 }
  0x89   : > { %v532_v47 = vpop.permute.xlu0 %531  ;;  %v565_v52 = vrot.slane %v562_v46, 4 }
  0x8a   : > { %543 = vst.msk [vmem:[#allocation3 + $0x8] sm:$0xc] %vm542_vm2, %v532_v47  ;;  %v534_v53 = vrot.slane %v532_v47, 4 }
  0x8c   : > { %v594_v48 = vpop.permute.xlu1 %593 }
  0x8d   : > { %v622_v49 = vpop.permute.xlu0 %621  ;;  %603 = vst.msk [vmem:[#allocation3 + $0x14] sm:$0xc] %vm542_vm2, %v594_v48  ;;  %v596_v62 = vrot.slane %v594_v48, 4 }
  0x8e   : > { %v625_v63 = vrot.slane %v622_v49, 4 }
  0x90   : > { %v564_v50 = vpop.permute.xlu1 %563 }
  0x91   : > { %v530_v51 = vpop.permute.xlu0 %529  ;;  %v566_v54 = vrot.slane %v564_v50, 4  ;;  %573 = vst.msk [vmem:[#allocation3 + $0x14] sm:$0x3] %vm510_vm0, %v564_v50 }
  0x92   : > { %v533_v55 = vrot.slane %v530_v51, 4 }
  0x93   : > { %v567_v56 = vsel %vm535_vm3, %v565_v52, %v566_v54 }
  0x94   : > { %v536_v57 = vsel %vm535_vm3, %v533_v55, %v534_v53  ;;  %v569_v58 = vsel %vm568_vm4, %v562_v46, %v567_v56  ;;  %v624_v60 = vpop.permute.xlu1 %623  ;;  %v2868_v55 = vsub.s32 0, %v2750_v4 }
  0x95   : > { %v538_v59 = vsel %vm537_vm5, %v530_v51, %v536_v57  ;;  %v592_v61 = vpop.permute.xlu0 %591  ;;  %572 = vst [vmem:[#allocation3 + $0xc] sm:$0x33] %v569_v58  ;;  %v626_v0 = vrot.slane %v624_v60, 4  ;;  %633 = vst.msk [vmem:[#allocation3 + $0x20] sm:$0x3] %vm510_vm0, %v624_v60  ;;  %v942_v51 = vsub.s32 4, %v2750_v4 }
  0x96   : > { %541 = vst [vmem:[#allocation3] sm:$0xcc] %v538_v59  ;;  %v595_v1 = vrot.slane %v592_v61, 4  ;;  %v938_v57 = vsub.s32 2, %v2750_v4 }
  0x97   : > { %v627_v2 = vsel %vm535_vm3, %v625_v63, %v626_v0 }
  0x98   : > { %v597_v3 = vsel %vm535_vm3, %v595_v1, %v596_v62  ;;  %v629_v5 = vsel %vm628_vm6, %v622_v49, %v627_v2  ;;  %v654_v8 = vpop.permute.xlu1 %653  ;;  %v2607_v10 = vld [vmem:[#allocation3 + $0x8] ss:$12 sps:$4 sm:$0xff]  }
  0x99   : > { %v599_v7 = vsel %vm598_vm7, %v592_v61, %v597_v3  ;;  %v652_v9 = vpop.permute.xlu0 %651  ;;  %632 = vst [vmem:[#allocation3 + $0x18] sm:$0x33] %v629_v5  ;;  %v656_v11 = vrot.slane %v654_v8, 4  ;;  %663 = vst.msk [vmem:[#allocation3 + $0x20] sm:$0xc] %vm542_vm2, %v654_v8  ;;  %2438 = vmatpush3.bf16.msra.mxu1 %v2607_v10 }
  0x9a   : > { %602 = vst [vmem:[#allocation3 + $0xc] sm:$0xcc] %v599_v7  ;;  %v655_v12 = vrot.slane %v652_v9, 4  ;;  %2439 = vmatprep.subr.bf16.mxu1 %v2657_v25  ;;  %v2860_v49 = vld [vmem:[%s2857_s25] sm:$0x3f] }
  0x9b   : > { %v2300_v50 = vrot.slane %v2860_v49, 9 }
  0x9c   : > { %v657_v13 = vsel %vm535_vm3, %v655_v12, %v656_v11  ;;  %v684_v15 = vpop.permute.xlu1 %683 }
  0x9d   : > { %v659_v14 = vsel %vm658_vm8, %v652_v9, %v657_v13  ;;  %v682_v16 = vpop.permute.xlu0 %681  ;;  %v686_v17 = vrot.slane %v684_v15, 4  ;;  %693 = vst.msk [vmem:[#allocation3 + $0x2c] sm:$0x3] %vm510_vm0, %v684_v15  ;;  %v756_v20 = vld [vmem:[#allocation3] sm:$0xff]  ;;  %v489_v52 = vadd.f32 %v2300_v50, %v2860_v49 }
  0x9e   : > { %662 = vst [vmem:[#allocation3 + $0x18] sm:$0xcc] %v659_v14  ;;  %v685_v18 = vrot.slane %v682_v16, 4 }
  0x9f   : > { %v943_v53 = vrot.slane %v489_v52, %v942_v51  ;;  %v935_v63 = vrot.slane %v489_v52, %v2868_v55  ;;  %v939_v5 = vrot.slane %v489_v52, %v938_v57 }
  0xa0   : > { %v687_v19 = vsel %vm535_vm3, %v685_v18, %v686_v17  ;;  %v714_v22 = vpop.permute.xlu1 %713 }
  0xa1   : > { %v689_v21 = vsel %vm688_vm9, %v682_v16, %v687_v19  ;;  %v712_v23 = vpop.permute.xlu0 %711  ;;  %v758_v24 = vld [vmem:[#allocation3 + $0xc] sm:$0xff]  ;;  %v716_v27 = vrot.slane %v714_v22, 4  ;;  %723 = vst.msk [vmem:[#allocation3 + $0x2c] sm:$0xc] %vm542_vm2, %v714_v22  ;;  %v958_v60 = vrot.slane %v943_v53, %v2868_v55  ;;  %v950_v14 = vrot.slane %v935_v63, %v2868_v55 }
  0xa2   : > { %v2608_v26 = vld [vmem:[#allocation3 + $0x4] ss:$12 sps:$4 sm:$0xff]   ;;  %692 = vst [vmem:[#allocation3 + $0x24] sm:$0x33] %v689_v21  ;;  %v715_v28 = vrot.slane %v712_v23, 4  ;;  %v2303_v29 = vcombine.low %v756_v20, %v758_v24  ;;  %v954_v19 = vrot.slane %v939_v5, %v2868_v55  ;;  %vm986_vm2 = vcmask 416768  }
  0xa3   : > { %837 = vmatprep.subr.bf16.mxu0 %v2608_v26 }
  0xa4   : > { %v717_v30 = vsel %vm535_vm3, %v715_v28, %v716_v27  ;;  %838 = vmatpush1.bf16.msra.mxu0 %v2303_v29  ;;  %v744_v32 = vpop.permute.xlu1 %743 }
  0xa5   : > { %v719_v31 = vsel %vm718_vm10, %v712_v23, %v717_v30  ;;  %v742_v33 = vpop.permute.xlu0 %741  ;;  %v746_v34 = vrot.slane %v744_v32, 4  ;;  %753 = vst.msk [vmem:[#allocation3 + $0x38] sm:$0x3] %vm510_vm0, %v744_v32  ;;  %vm977_vm0 = vcmask 154624  }
  0xa6   : > { %722 = vst [vmem:[#allocation3 + $0x24] sm:$0xcc] %v719_v31  ;;  %v745_v35 = vrot.slane %v742_v33, 4 }
  0xa8   : > { %v747_v36 = vsel %vm535_vm3, %v745_v35, %v746_v34  ;;  %v2610_v38 = vld [vmem:[#allocation3 + $0x20] ss:$12 sps:$4 sm:$0xff]   ;;  %vm993_vm3 = vcmask 261120  }
  0xa9   : > { %v749_v37 = vsel %vm748_vm11, %v742_v33, %v747_v36  ;;  %2440 = vmatpush3.bf16.msra.mxu1 %v2610_v38 }
  0xaa   : > { %752 = vst [vmem:[#allocation3 + $0x30] sm:$0x33] %v749_v37  ;;  %2441 = vmatprep.subr.bf16.mxu1 %v2657_v25 }
  0xac   : > { %v2614_v41 = vld [vmem:[#allocation3 + $0x38] ss:$0 sps:$4 sm:$0x33]  }
  0xad   : > { %v2611_v39 = vld [vmem:[#allocation3 + $0x1c] ss:$12 sps:$4 sm:$0xff]   ;;  %v2613_v40 = vld [vmem:[#allocation3 + $0x18] ss:$12 sps:$4 sm:$0xff]   ;;  %v835_v42 = vsel %vm827_vm12, %v2614_v41, 0  ;;  %v1185_v41 = vld [vmem:[%s3260_s6 + $0x8] sm:$0xff] }
  0xae   : > { %839 = vmatprep.subr.bf16.mxu0 %v2611_v39  ;;  %2442 = vmatpush3.bf16.msra.mxu1 %v835_v42  ;;  %v2618_v39 = vld [vmem:[%s3259_s5 + $0x4] ss:$8 sps:$4 sm:$0xff]  }
  0xaf   : > { %840 = vmatpush1.bf16.msra.mxu0 %v2613_v40  ;;  %1252 = vmatprep.subr.bf16.mxu1 %v2662_v43  ;;  %v1184_v40 = vld [vmem:[%s3260_s6] sm:$0xff] }
  0xb1   : > { %v764_v45 = vld [vmem:[#allocation3 + $0x30] sm:$0x33]  ;;  %2444 = vmatmul.mubr.msk.bf16.vlgmr.msra.gmra.mrb[0].mxu1 %vm823_vm13, %v2617_v44 }
  0xb2   : > { %v2310_v46 = vcombine.high %v764_v45, %v764_v45  ;;  %v2309_v47 = vcombine.low %v764_v45, %v764_v45 }
  0xb4   : > { %2312 = vmatprep.subr.msk.bf16.mxu0 %vm827_vm12, %v2310_v46  ;;  %v829_v48 = vsel %vm827_vm12, %v2309_v47, 0 }
  0xb5   : > { %842 = vmatpush1.bf16.msra.mxu0 %v829_v48  ;;  %v776_v58 = vpop.permute.xlu1 %775 }
  0xb6   : > { %v771_v54 = vpop.permute.xlu0 %770 }
  0xb8   : > { %2313 = vmatmul.mubr.msk.bf16.vlgmr.msra.gmra.mrb[0].mxu0 %vm823_vm13, %v2617_v44  ;;  %vm1205_vm13 = vcmask 130048  }
  0xb9   : > { %2318 = vmatprep.mubr.msk.bf16.mxu1 %vm1205_vm13, %v2618_v39  ;;  %2317 = vmatprep.mubr.msk.bf16.mxu0 %vm1205_vm13, %v2618_v39  ;;  %v2620_v39 = vld [vmem:[%s3259_s5] ss:$8 sps:$4 sm:$0xff]  }
 0x184   : > { %v914_v56 = vpop.f32.mrb[0].mxu1 }
 0x185   : > { %v915_v59 = vadd.f32 %v914_v56, %v771_v54  ;;  %v2445_v61 = vpop.f32.mrb[1].mxu1 }
 0x186   : > { %v917_v62 = vpop.f32.mrb[2].mxu1 }
 0x187   : > { %v923_v0 = vmax.f32 %v915_v59, 0.0  ;;  %v918_v1 = vadd.f32 %v917_v62, %v776_v58  ;;  %v2446_v2 = vpop.f32.mrb[3].mxu1 }
 0x189   : > { %v961_v8 = vmul.f32 %v958_v60, %v923_v0  ;;  %v926_v10 = vmax.f32 %v918_v1, 0.0 }
 0x18b   : > { %v871_v3 = vpop.f32.mrb[0].mxu0  ;;  %v964_v16 = vmul.f32 %v958_v60, %v926_v10 }
 0x18c   : > { %v872_v7 = vadd.f32 %v871_v3, %v771_v54  ;;  %v873_v9 = vpop.f32.mrb[1].mxu0 }
 0x18d   : > { %v874_v11 = vadd.f32 %v873_v9, %v771_v54  ;;  %v875_v12 = vpop.f32.mrb[2].mxu0  ;;  %v967_v22 = vpack.c.bf16 %v964_v16, %v961_v8 }
 0x18e   : > { %v921_v13 = vmax.f32 %v872_v7, 0.0  ;;  %v876_v15 = vadd.f32 %v875_v12, %v776_v58  ;;  %v877_v17 = vpop.f32.mrb[3].mxu0 }
 0x18f   : > { %v922_v18 = vmax.f32 %v874_v11, 0.0  ;;  %v878_v20 = vadd.f32 %v877_v17, %v776_v58 }
 0x190   : > { %v924_v21 = vmax.f32 %v876_v15, 0.0  ;;  %v959_v24 = vmul.f32 %v950_v14, %v921_v13 }
 0x191   : > { %v925_v23 = vmax.f32 %v878_v20, 0.0  ;;  %v960_v27 = vmul.f32 %v954_v19, %v922_v18 }
 0x192   : > { %v962_v26 = vmul.f32 %v950_v14, %v924_v21 }
 0x193   : > { %v963_v28 = vmul.f32 %v954_v19, %v925_v23 }
 0x194   : > { %v965_v29 = vpack.c.bf16 %v962_v26, %v959_v24 }
 0x195   : > { %v966_v30 = vpack.c.bf16 %v963_v28, %v960_v27 }
 0x196   : > { %971 = vrot.lane.b32.xlu1 %v965_v29, %s2664_s10 }
 0x197   : > { %973 = vrot.lane.b32.xlu0 %v966_v30, %s2664_s10 }
 0x19a   : > { %975 = vrot.lane.b32.xlu1 %v967_v22, %s2664_s10 }
 0x208   : > { %v972_v31 = vpop.permute.xlu1 %971 }
 0x209   : > { %984 = vst.msk [vmem:[#allocation2] sm:$0xff] %vm983_vm15, %v972_v31  ;;  %v974_v32 = vpop.permute.xlu0 %973 }
 0x20a   : > { %v978_v33 = vsel %vm977_vm0, %v972_v31, %v974_v32 }
 0x20b   : > { %1209 = vmatprep.subr.bf16.mxu0 %v978_v33 }
 0x20c   : > { %v976_v34 = vpop.permute.xlu1 %975 }
 0x20d   : > { %v979_v35 = vsel %vm977_vm0, %v974_v32, %v976_v34 }
 0x20e   : > { %987 = vst.msk [vmem:[#allocation2 + $0x10] sm:$0xff] %vm986_vm2, %v979_v35 }
 0x210   : > { %v988_v36 = vld [vmem:[#allocation2] sm:$0xff] }
 0x211   : > { %1001 = vrot.lane.b32.xlu0 %v988_v36, %s2654_s16  ;;  %1021 = vrot.lane.b32.xlu1 %v988_v36, %s2653_s15 }
 0x212   : > { %1210 = vmatpush1.bf16.msra.mxu0 %v988_v36 }
 0x215   : > { %v990_v37 = vld [vmem:[#allocation2 + $0x10] sm:$0xff]  ;;  %1041 = vrot.lane.b32.xlu0 %v988_v36, %s2655_s17  ;;  %1061 = vrot.lane.b32.xlu1 %v988_v36, %s2656_s18 }
 0x216   : > { %994 = vst.msk [vmem:[#allocation4 + $0x10] sm:$0xff] %vm993_vm3, %v990_v37 }
 0x219   : > { %1081 = vrot.lane.b32.xlu0 %v988_v36, %s2658_s19  ;;  %1101 = vrot.lane.b32.xlu1 %v988_v36, %s2659_s20 }
 0x21d   : > { %1121 = vrot.lane.b32.xlu0 %v988_v36, %s2660_s21  ;;  %1005 = vrot.lane.b32.xlu1 %v990_v37, %s2654_s16  ;;  %v1159_v38 = vld [vmem:[#allocation4 + $0x10] sm:$0xff] }
 0x21e   : > { %1253 = vmatpush1.bf16.msra.mxu1 %v1159_v38 }
 0x21f   : > { %1254 = vmatprep.subr.bf16.mxu1 %v2662_v43 }
 0x221   : > { %1003 = vrot.lane.b32.xlu0 %v978_v33, %s2654_s16  ;;  %1023 = vrot.lane.b32.xlu1 %v978_v33, %s2653_s15 }
 0x225   : > { %1025 = vrot.lane.b32.xlu0 %v990_v37, %s2653_s15  ;;  %1045 = vrot.lane.b32.xlu1 %v990_v37, %s2655_s17 }
 0x229   : > { %1043 = vrot.lane.b32.xlu0 %v978_v33, %s2655_s17  ;;  %1063 = vrot.lane.b32.xlu1 %v978_v33, %s2656_s18 }
 0x22d   : > { %1065 = vrot.lane.b32.xlu0 %v990_v37, %s2656_s18  ;;  %1085 = vrot.lane.b32.xlu1 %v990_v37, %s2658_s19 }
 0x231   : > { %1083 = vrot.lane.b32.xlu0 %v978_v33, %s2658_s19  ;;  %1103 = vrot.lane.b32.xlu1 %v978_v33, %s2659_s20 }
 0x235   : > { %1105 = vrot.lane.b32.xlu0 %v990_v37, %s2659_s20  ;;  %1125 = vrot.lane.b32.xlu1 %v990_v37, %s2660_s21  ;;  %s2666_s20 = smov 1  }
 0x239   : > { %1123 = vrot.lane.b32.xlu0 %v978_v33, %s2660_s21  ;;  %1143 = vrot.lane.b32.xlu1 %v978_v33, %s2661_s22  ;;  %s2571_s21 = smul.u32 288, %s3269_s28 }
 0x23b   : > { %s2943_s24 = scalar_lea.vmem %s3256_s2, %s2571_s21 }
 0x23c   : > { %v1309_v27 = vld [vmem:[%s2943_s24 + $0x80] sm:$0xff]  ;;  %v1310_v28 = vld [vmem:[%s2943_s24 + $0x88] sm:$0xff]  ;;  %v1312_v38 = vld [vmem:[%s2943_s24 + $0x98] sm:$0xff] }
 0x23d   : > { %1145 = vrot.lane.b32.xlu0 %v990_v37, %s2661_s22  ;;  %1141 = vrot.lane.b32.xlu1 %v988_v36, %s2661_s22  ;;  %v2952_v32 = vpack.c.bf16 %v1310_v28, %v1309_v27  ;;  %v1293_v33 = vld [vmem:[%s2943_s24] sm:$0xff]  ;;  %v1294_v34 = vld [vmem:[%s2943_s24 + $0x8] sm:$0xff] }
 0x23e   : > { %v1311_v37 = vld [vmem:[%s2943_s24 + $0x90] sm:$0xff]  ;;  %v1308_v28 = vld [vmem:[%s2943_s24 + $0x78] sm:$0xff] }
 0x23f   : > { %v1307_v27 = vld [vmem:[%s2943_s24 + $0x70] sm:$0xff] }
 0x241   : > { %1188 = vperm.xlu0 %2596, %v1184_v40   ;;  %1193 = vperm.xlu1 %2597, %v1185_v41   ;;  %v2965_v40 = vpack.c.bf16 %v1294_v34, %v1293_v33  ;;  %v1325_v41 = vld [vmem:[%s2943_s24 + $0x100] sm:$0xff]  ;;  %v3050_v34 = vrot.slane %v2860_v49, %v2868_v55 }
 0x283   : > { %v1002_v42 = vpop.permute.xlu0 %1001  ;;  %v1022_v44 = vpop.permute.xlu1 %1021 }
 0x287   : > { %v1042_v45 = vpop.permute.xlu0 %1041  ;;  %v1062_v46 = vpop.permute.xlu1 %1061 }
 0x28b   : > { %v1082_v47 = vpop.permute.xlu0 %1081  ;;  %v1102_v48 = vpop.permute.xlu1 %1101 }
 0x28f   : > { %v2915_v50 = vpop.permute.xlu0 %1121  ;;  %v1006_v52 = vpop.permute.xlu1 %1005 }
 0x290   : > { %1014 = vst.msk [vmem:[#allocation4 + $0x28] sm:$0xff] %vm993_vm3, %v1006_v52 }
 0x293   : > { %v1004_v53 = vpop.permute.xlu0 %1003  ;;  %v1024_v54 = vpop.permute.xlu1 %1023 }
 0x294   : > { %v1007_v56 = vsel %vm537_vm5, %v1002_v42, %v1004_v53  ;;  %v1008_v58 = vsel %vm537_vm5, %v1004_v53, %v1006_v52  ;;  %v1027_v59 = vsel %vm568_vm4, %v1022_v44, %v1024_v54  ;;  %v1326_v42 = vld [vmem:[%s2943_s24 + $0x108] sm:$0xff]  ;;  %vm1666_vm5 = vcmask 253952  }
 0x295   : > { %1211 = vmatprep.subr.bf16.mxu0 %v1008_v58  ;;  %v2977_v52 = vpack.c.bf16 %v1326_v42, %v1325_v41  ;;  %v1297_v58 = vld [vmem:[%s2943_s24 + $0x20] sm:$0xff] }
 0x296   : > { %1212 = vmatpush1.bf16.msra.mxu0 %v1007_v56 }
 0x297   : > { %v1026_v60 = vpop.permute.xlu0 %1025  ;;  %v1046_v61 = vpop.permute.xlu1 %1045  ;;  %v1162_v62 = vld [vmem:[#allocation4 + $0x28] sm:$0xff] }
 0x298   : > { %v1028_v63 = vsel %vm568_vm4, %v1024_v54, %v1026_v60  ;;  %1034 = vst.msk [vmem:[#allocation4 + $0x40] sm:$0xff] %vm993_vm3, %v1026_v60  ;;  %1054 = vst.msk [vmem:[#allocation4 + $0x58] sm:$0xff] %vm993_vm3, %v1046_v61  ;;  %1255 = vmatpush1.bf16.msra.mxu1 %v1162_v62  ;;  %v1315_v60 = vld [vmem:[%s2943_s24 + $0xb0] sm:$0xff]  ;;  %vm1662_vm4 = vcmask 1040384  }
 0x299   : > { %1256 = vmatprep.subr.bf16.mxu1 %v2662_v43  ;;  %1213 = vmatprep.subr.bf16.mxu0 %v1028_v63 }
 0x29a   : > { %1214 = vmatpush1.bf16.msra.mxu0 %v1027_v59  ;;  %v1298_v59 = vld [vmem:[%s2943_s24 + $0x28] sm:$0xff] }
 0x29b   : > { %v1044_v0 = vpop.permute.xlu0 %1043  ;;  %v1064_v1 = vpop.permute.xlu1 %1063  ;;  %v2991_v62 = vpack.c.bf16 %v1298_v59, %v1297_v58 }
 0x29c   : > { %v1047_v2 = vsel %vm598_vm7, %v1042_v45, %v1044_v0  ;;  %v1048_v3 = vsel %vm598_vm7, %v1044_v0, %v1046_v61  ;;  %v1067_v5 = vsel %vm628_vm6, %v1062_v46, %v1064_v1  ;;  %v2970_v45 = vpack.c.bf16 %v1312_v38, %v1311_v37  ;;  %v1295_v46 = vld [vmem:[%s2943_s24 + $0x10] sm:$0xff]  ;;  %v1316_v61 = vld [vmem:[%s2943_s24 + $0xb8] sm:$0xff]  ;;  %v1965_v37 = vld [vmem:[%s2761_s14] sm:$0x3f] }
 0x29d   : > { %1215 = vmatprep.subr.bf16.mxu0 %v1048_v3  ;;  %v2994_v63 = vpack.c.bf16 %v1316_v61, %v1315_v60  ;;  %v1299_v0 = vld [vmem:[%s2943_s24 + $0x30] sm:$0xff]  ;;  %v1318_v3 = vld [vmem:[%s2943_s24 + $0xc8] sm:$0xff]  ;;  %v1991_v41 = vrot.slane %v1965_v37, %v2754_v6  ;;  %vm2008_vm7 = vcmask 31744  }
 0x29e   : > { %1216 = vmatpush1.bf16.msra.mxu0 %v1047_v2  ;;  %v1317_v2 = vld [vmem:[%s2943_s24 + $0xc0] sm:$0xff] }
 0x29f   : > { %v1066_v7 = vpop.permute.xlu0 %1065  ;;  %v1086_v8 = vpop.permute.xlu1 %1085  ;;  %v1165_v9 = vld [vmem:[#allocation4 + $0x40] sm:$0xff]  ;;  %v1168_v13 = vld [vmem:[#allocation4 + $0x58] sm:$0xff]  ;;  %2000 = vrot.lane.b32.xlu1 %v1991_v41, %s2656_s18  ;;  %v1999_v42 = vcombine.high %v1991_v41, %v1991_v41 }
 0x2a0   : > { %v1068_v10 = vsel %vm628_vm6, %v1064_v1, %v1066_v7  ;;  %1074 = vst.msk [vmem:[#allocation4 + $0x70] sm:$0xff] %vm993_vm3, %v1066_v7  ;;  %1094 = vst.msk [vmem:[#allocation4 + $0x88] sm:$0xff] %vm993_vm3, %v1086_v8  ;;  %1257 = vmatpush1.bf16.msra.mxu1 %v1165_v9  ;;  %v1300_v1 = vld [vmem:[%s2943_s24 + $0x38] sm:$0xff]  ;;  %v3005_v7 = vpack.c.bf16 %v1318_v3, %v1317_v2  ;;  %v1302_v9 = vld [vmem:[%s2943_s24 + $0x48] sm:$0xff] }
 0x2a1   : > { %1258 = vmatprep.subr.bf16.mxu1 %v2662_v43  ;;  %1217 = vmatprep.subr.bf16.mxu0 %v1068_v10  ;;  %v1319_v10 = vld [vmem:[%s2943_s24 + $0xd0] sm:$0xff] }
 0x2a2   : > { %1218 = vmatpush1.bf16.msra.mxu0 %v1067_v5  ;;  %v3002_v5 = vpack.c.bf16 %v1300_v1, %v1299_v0 }
 0x2a3   : > { %v1084_v11 = vpop.permute.xlu0 %1083  ;;  %v1104_v12 = vpop.permute.xlu1 %1103  ;;  %2002 = vrot.lane.b32.xlu1 %v1999_v42, %s2656_s18 }
 0x2a4   : > { %v1087_v14 = vsel %vm658_vm8, %v1082_v47, %v1084_v11  ;;  %v1088_v15 = vsel %vm658_vm8, %v1084_v11, %v1086_v8  ;;  %v1107_v16 = vsel %vm688_vm9, %v1102_v48, %v1104_v12  ;;  %1259 = vmatpush1.bf16.msra.mxu1 %v1168_v13  ;;  %v1296_v47 = vld [vmem:[%s2943_s24 + $0x18] sm:$0xff]  ;;  %v1313_v48 = vld [vmem:[%s2943_s24 + $0xa0] sm:$0xff] }
 0x2a5   : > { %1260 = vmatprep.subr.bf16.mxu1 %v2662_v43  ;;  %1219 = vmatprep.subr.bf16.mxu0 %v1088_v15  ;;  %v2980_v53 = vpack.c.bf16 %v1296_v47, %v1295_v46  ;;  %v1301_v8 = vld [vmem:[%s2943_s24 + $0x40] sm:$0xff]  ;;  %v1320_v11 = vld [vmem:[%s2943_s24 + $0xd8] sm:$0xff] }
 0x2a6   : > { %1220 = vmatpush1.bf16.msra.mxu0 %v1087_v14  ;;  %v3015_v13 = vpack.c.bf16 %v1320_v11, %v1319_v10  ;;  %v1303_v14 = vld [vmem:[%s2943_s24 + $0x50] sm:$0xff]  ;;  %v1304_v15 = vld [vmem:[%s2943_s24 + $0x58] sm:$0xff] }
 0x2a7   : > { %v1106_v17 = vpop.permute.xlu0 %1105  ;;  %v1126_v18 = vpop.permute.xlu1 %1125  ;;  %v1171_v19 = vld [vmem:[#allocation4 + $0x70] sm:$0xff]  ;;  %v1174_v23 = vld [vmem:[#allocation4 + $0x88] sm:$0xff] }
 0x2a8   : > { %v1108_v20 = vsel %vm688_vm9, %v1104_v12, %v1106_v17  ;;  %1114 = vst.msk [vmem:[#allocation4 + $0xa0] sm:$0xff] %vm993_vm3, %v1106_v17  ;;  %1134 = vst.msk [vmem:[#allocation4 + $0xb8] sm:$0xff] %vm993_vm3, %v1126_v18  ;;  %1261 = vmatpush1.bf16.msra.mxu1 %v1171_v19  ;;  %v3012_v12 = vpack.c.bf16 %v1302_v9, %v1301_v8  ;;  %v1322_v17 = vld [vmem:[%s2943_s24 + $0xe8] sm:$0xff] }
 0x2a9   : > { %1262 = vmatprep.subr.bf16.mxu1 %v2662_v43  ;;  %1221 = vmatprep.subr.bf16.mxu0 %v1108_v20  ;;  %v1305_v20 = vld [vmem:[%s2943_s24 + $0x60] sm:$0xff] }
 0x2aa   : > { %1222 = vmatpush1.bf16.msra.mxu0 %v1107_v16  ;;  %v1321_v16 = vld [vmem:[%s2943_s24 + $0xe0] sm:$0xff] }
 0x2ab   : > { %v1124_v21 = vpop.permute.xlu0 %1123  ;;  %v1144_v22 = vpop.permute.xlu1 %1143  ;;  %v3025_v19 = vpack.c.bf16 %v1322_v17, %v1321_v16 }
 0x2ac   : > { %v1127_v24 = vsel %vm718_vm10, %v2915_v50, %v1124_v21  ;;  %v1128_v26 = vsel %vm718_vm10, %v1124_v21, %v1126_v18  ;;  %1263 = vmatpush1.bf16.msra.mxu1 %v1174_v23  ;;  %v1314_v50 = vld [vmem:[%s2943_s24 + $0xa8] sm:$0xff]  ;;  %v3022_v18 = vpack.c.bf16 %v1304_v15, %v1303_v14  ;;  %v1323_v23 = vld [vmem:[%s2943_s24 + $0xf0] sm:$0xff]  ;;  %v3136_v14 = vld [vmem:[%s3261_s7] sm:$0xff]  }
 0x2ad   : > { %1264 = vmatprep.subr.bf16.mxu1 %v2662_v43  ;;  %1223 = vmatprep.subr.bf16.mxu0 %v1128_v26  ;;  %v2983_v56 = vpack.c.bf16 %v1314_v50, %v1313_v48  ;;  %v1306_v21 = vld [vmem:[%s2943_s24 + $0x68] sm:$0xff] }
 0x2ae   : > { %1224 = vmatpush1.bf16.msra.mxu0 %v1127_v24  ;;  %v1324_v24 = vld [vmem:[%s2943_s24 + $0xf8] sm:$0xff] }
 0x2af   : > { %v1146_v29 = vpop.permute.xlu0 %1145  ;;  %v1142_v30 = vpop.permute.xlu1 %1141  ;;  %v1177_v31 = vld [vmem:[#allocation4 + $0xa0] sm:$0xff]  ;;  %v1180_v44 = vld [vmem:[#allocation4 + $0xb8] sm:$0xff]  ;;  %v3036_v26 = vpack.c.bf16 %v1324_v24, %v1323_v23 }
 0x2b0   : > { %v1148_v35 = vsel %vm748_vm11, %v1144_v22, %v1146_v29  ;;  %1154 = vst.msk [vmem:[#allocation4 + $0xd0] sm:$0xff] %vm993_vm3, %v1146_v29  ;;  %v1147_v36 = vsel %vm748_vm11, %v1142_v30, %v1144_v22  ;;  %1265 = vmatpush1.bf16.msra.mxu1 %v1177_v31  ;;  %v3031_v22 = vpack.c.bf16 %v1306_v21, %v1305_v20  ;;  %v1327_v30 = vld [vmem:[%s2943_s24 + $0x110] sm:$0xff]  ;;  %v1328_v31 = vld [vmem:[%s2943_s24 + $0x118] sm:$0xff]  ;;  %vm1820_vm11 = vcmask 7168  }
 0x2b1   : > { %1266 = vmatprep.subr.bf16.mxu1 %v2662_v43  ;;  %1225 = vmatprep.subr.bf16.mxu0 %v1148_v35  ;;  %v3040_v29 = vpack.c.bf16 %v1308_v28, %v1307_v27  ;;  %v2523_v33 = vpack.c.bf16 %v1328_v31, %v1327_v30  ;;  %v3055_v35 = vrot.slane %v2860_v49, %v938_v57 }
 0x2b2   : > { %1226 = vmatpush1.bf16.msra.mxu0 %v1147_v36  ;;  %v3060_v36 = vrot.slane %v2860_v49, %v942_v51 }
 0x2b3   : > { %2488 = vmatprep.subr.bf16.mxu0 %v2952_v32  ;;  %v1664_v38 = vsel %vm1662_vm4, %v3055_v35, 0.0 }
 0x2b4   : > { %1267 = vmatpush1.bf16.msra.mxu1 %v1180_v44  ;;  %v1984_v44 = vcombine.high %v1965_v37, %v1965_v37 }
 0x2b5   : > { %1268 = vmatprep.subr.bf16.mxu1 %v2662_v43  ;;  %1242 = vmatmul.mubr.bf16.vlgmr.msra.gmra.mrb[4].mxu0 %v2620_v39 }
 0x2b6   : > { %2490 = vmatpush3.bf16.msra.mxu0 %v2965_v40  ;;  %v1998_v51 = vrot.slane %v1984_v44, %v2754_v6 }
 0x2b7   : > { %v1183_v54 = vld [vmem:[#allocation4 + $0xd0] sm:$0xff]  ;;  %2492 = vmatprep.subr.bf16.mxu0 %v2970_v45 }
 0x2b8   : > { %1269 = vmatpush1.bf16.msra.mxu1 %v1183_v54  ;;  %2004 = vrot.lane.b32.xlu1 %v1998_v51, %s2656_s18 }
 0x2b9   : > { %2520 = vmatprep.subr.bf16.mxu1 %v2977_v52 }
 0x2ba   : > { %2494 = vmatpush3.bf16.msra.mxu0 %v2980_v53 }
 0x2bb   : > { %1285 = vmatmul.mubr.bf16.vlgmr.msra.gmra.mrb[4].mxu1 %v2620_v39  ;;  %2496 = vmatprep.subr.bf16.mxu0 %v2983_v56  ;;  %v1667_v39 = vsel %vm1666_vm5, %v3060_v36, 0.0 }
 0x2bc   : > { %2522 = vmatpush3.bf16.msra.mxu1 %v2977_v52 }
 0x2bd   : > { %2524 = vmatprep.subr.bf16.mxu1 %v2523_v33 }
 0x2be   : > { %2498 = vmatpush3.bf16.msra.mxu0 %v2991_v62 }
 0x2bf   : > { %2500 = vmatprep.subr.bf16.mxu0 %v2994_v63 }
 0x2c0   : > { %2526 = vmatpush3.bf16.msra.mxu1 %v2523_v33  ;;  %v1189_v47 = vpop.permute.xlu0 %1188  ;;  %v1194_v58 = vpop.permute.xlu1 %1193 }
 0x2c1   : > { %2528 = vmatprep.subr.bf16.mxu1 %v2952_v32  ;;  %v1663_v32 = vsel %vm1662_vm4, %v3050_v34, 0.0 }
 0x2c2   : > { %2502 = vmatpush3.bf16.msra.mxu0 %v3002_v5  ;;  %v1665_v57 = vadd.f32 %v1664_v38, %v1663_v32  ;;  %v1740_v32 = vld [vmem:[%s3263_s9] sm:$0x1] }
 0x2c3   : > { %2504 = vmatprep.subr.bf16.mxu0 %v3005_v7 }
 0x2c4   : > { %v1668_v49 = vadd.f32 %v1667_v39, %v1665_v57 }
 0x2c6   : > { %2506 = vmatpush3.bf16.msra.mxu0 %v3012_v12  ;;  %1669 = vadd.xlane.f32.xlu0 %v1668_v49 }
 0x2c7   : > { %2508 = vmatprep.subr.bf16.mxu0 %v3015_v13 }
 0x2ca   : > { %2510 = vmatpush3.bf16.msra.mxu0 %v3022_v18 }
 0x2cb   : > { %2512 = vmatprep.subr.bf16.mxu0 %v3025_v19 }
 0x2ce   : > { %2514 = vmatpush3.bf16.msra.mxu0 %v3031_v22 }
 0x2cf   : > { %2516 = vmatprep.subr.bf16.mxu0 %v3036_v26 }
 0x2d2   : > { %2518 = vmatpush3.bf16.msra.mxu0 %v3040_v29 }
 0x2d3   : > { %2560 = vmatprep.subr.bf16.mxu0 %v2977_v52 }
 0x388   : > { %v1243_v46 = vpop.f32.mrb[4].mxu0 }
 0x389   : > { %v1245_v48 = vpop.f32.mrb[5].mxu0  ;;  %v3075_v59 = vadd.f32 %v1243_v46, %v1189_v47 }
 0x38a   : > { %v3073_v50 = vadd.f32 %v1245_v48, %v1189_v47  ;;  %v1247_v54 = vpop.f32.mrb[6].mxu0 }
 0x38b   : > { %v1249_v60 = vpop.f32.mrb[7].mxu0  ;;  %v3085_v2 = vadd.f32 %v1247_v54, %v1194_v58 }
 0x38c   : > { %v3077_v61 = vadd.f32 %v1249_v60, %v1194_v58  ;;  %1399 = vmatprep.mubr.f32.mxu0 %v3073_v50 }
 0x38d   : > { %1400 = vmatmul.mubr.f32.vlgmr.msra.gmra.mrb[8].mxu0 %v3075_v59 }
 0x38e   : > { %v1286_v0 = vpop.f32.mrb[4].mxu1  ;;  %1404 = vmatprep.mubr.f32.mxu0 %v3077_v61  ;;  %2562 = vmatpush3.bf16.msra.mxu0 %v2977_v52  ;;  %v1486_v52 = vmul.f32 %v3073_v50, %v3073_v50 }
 0x38f   : > { %v3083_v6 = vadd.f32 %v1286_v0, %v1189_v47  ;;  %v1288_v1 = vpop.f32.mrb[5].mxu1  ;;  %2564 = vmatprep.subr.bf16.mxu0 %v2523_v33 }
 0x390   : > { %v1289_v3 = vpop.f32.mrb[6].mxu1 }
 0x391   : > { %v3087_v8 = vadd.f32 %v1289_v3, %v1194_v58  ;;  %2455 = vmatprep.mubr.msk.f32.mxu1 %vm993_vm3, %v3083_v6  ;;  %v1291_v9 = vpop.f32.mrb[7].mxu1  ;;  %1405 = vmatmul.mubr.f32.gmra.mrb[10].mxu0 %v3085_v2  ;;  %v1487_v10 = vmul.f32 %v3083_v6, %v3083_v6 }
 0x392   : > { %2566 = vmatpush3.bf16.msra.mxu0 %v2523_v33 }
 0x393   : > { %v1490_v11 = vmul.f32 %v3087_v8, %v3087_v8  ;;  %2456 = vmatmul.mubr.msk.f32.vlgmr.msra.gmra.mrb[8].mxu1 %vm993_vm3, %v3087_v8  ;;  %2466 = vmatprep.mubr.msk.f32.mxu0 %vm993_vm3, %v1487_v10 }
 0x394   : > { %2530 = vmatpush3.bf16.msra.mxu1 %v2965_v40  ;;  %1561 = vmatprep.mubr.f32.mxu1 %v1486_v52  ;;  %v1485_v40 = vmul.f32 %v3075_v59, %v3075_v59 }
 0x395   : > { %2532 = vmatprep.subr.bf16.mxu1 %v2970_v45  ;;  %2467 = vmatmul.mubr.msk.f32.vlgmr.msra.gmra.mrb[12].mxu0 %vm993_vm3, %v1490_v11  ;;  %v1489_v45 = vmul.f32 %v3077_v61, %v3077_v61 }
 0x396   : > { %2473 = vmatprep.mubr.msk.f32.mxu0 %vm2663_vm1, %v2657_v25 }
 0x398   : > { %2534 = vmatpush3.bf16.msra.mxu1 %v2980_v53  ;;  %v1488_v53 = vmul.f32 %v3085_v2, %v3085_v2 }
 0x399   : > { %2536 = vmatprep.subr.bf16.mxu1 %v2983_v56  ;;  %v2665_v56 = vmov 0.0|0.0  }
 0x39a   : > { %2567 = vmatprep.subr.bf16.mxu0 %v2665_v56 }
 0x39c   : > { %2538 = vmatpush3.bf16.msra.mxu1 %v2991_v62  ;;  %v2001_v62 = vpop.permute.xlu1 %2000 }
 0x39d   : > { %2540 = vmatprep.subr.bf16.mxu1 %v2994_v63 }
 0x3a0   : > { %2542 = vmatpush3.bf16.msra.mxu1 %v3002_v5  ;;  %v2003_v63 = vpop.permute.xlu1 %2002 }
 0x3a1   : > { %2544 = vmatprep.subr.bf16.mxu1 %v3005_v7  ;;  %v2006_v5 = vsel %vm628_vm6, %v2001_v62, %v2003_v63 }
 0x3a2   : > { %v2013_v7 = vsel %vm827_vm12, %v2006_v5, 0 }
 0x3a4   : > { %2546 = vmatpush3.bf16.msra.mxu1 %v3012_v12  ;;  %v3128_v12 = vpop.permute.xlu1 %2004 }
 0x3a5   : > { %2548 = vmatprep.subr.bf16.mxu1 %v3015_v13  ;;  %v2007_v13 = vsel %vm628_vm6, %v2003_v63, %v3128_v12 }
 0x3a8   : > { %2550 = vmatpush3.bf16.msra.mxu1 %v3022_v18 }
 0x3a9   : > { %2552 = vmatprep.subr.bf16.mxu1 %v3025_v19  ;;  %v1670_v19 = vpop.xlane.xlu0 %1669 }
 0x3aa   : > { %v1671_v27 = vsub.f32 256.0, %v1670_v19  ;;  %v1675_v31 = vadd.f32 1e-05, %v1670_v19 }
 0x3ac   : > { %2554 = vmatpush3.bf16.msra.mxu1 %v3031_v22  ;;  %v1672_v33 = vadd.f32 1e-05, %v1671_v27  ;;  %2623 = vrcp.f32 %v1675_v31 }
 0x3ad   : > { %2556 = vmatprep.subr.bf16.mxu1 %v3036_v26 }
 0x3ae   : > { %2625 = vrcp.f32 %v1672_v33 }
 0x3b0   : > { %2558 = vmatpush3.bf16.msra.mxu1 %v3040_v29 }
 0x3b1   : > { %2332 = vmatprep.subr.msk.bf16.mxu1 %vm827_vm12, %v2007_v13 }
 0x3b3   : > { %1562 = vmatmul.mubr.f32.vlgmr.msra.gmra.mrb[10].mxu1 %v1485_v40 }
 0x3b4   : > { %1566 = vmatprep.mubr.f32.mxu1 %v1489_v45  ;;  %2022 = vmatpush1.bf16.msra.mxu1 %v2013_v7 }
 0x3b6   : > { %v2624_v38 = vpop.eup %2623 }
 0x3b7   : > { %1567 = vmatmul.mubr.f32.gmra.mrb[12].mxu1 %v1488_v53  ;;  %v1687_v57 = vrot.slane %v2624_v38, %v2868_v55 }
 0x3b8   : > { %2053 = vmatprep.mubr.bf16.mxu1 %v2662_v43  ;;  %v2626_v39 = vpop.eup %2625 }
 0x3b9   : > { %v3145_v41 = vrot.slane %v2626_v39, %v2868_v55 }
 0x3bb   : > { %2333 = vmatmul.mubr.msk.bf16.vlgmr.msra.gmra.mrb[16].mxu1 %vm2008_vm7, %v3136_v14 }
 0x460   : > { %v2373_v43 = vpop.f32.mrb[8].mxu0 }
 0x461   : > { %v2374_v15 = vpop.f32.mrb[9].mxu0 }
 0x462   : > { %v2375_v16 = vadd.f32 %v2374_v15, %v2373_v43 }
 0x464   : > { %v2376_v17 = vpop.f32.mrb[10].mxu0 }
 0x465   : > { %v2377_v18 = vpop.f32.mrb[11].mxu0 }
 0x466   : > { %v2457_v20 = vpop.f32.mrb[8].mxu1  ;;  %v2378_v21 = vadd.f32 %v2377_v18, %v2376_v17 }
 0x467   : > { %v1476_v22 = vpop.f32.mrb[9].mxu1 }
 0x468   : > { %v1477_v23 = vadd.f32 %v2375_v16, %v1476_v22  ;;  %v1482_v24 = vadd.f32 %v2457_v20, %v2378_v21  ;;  %v2468_v26 = vpop.f32.mrb[12].mxu0 }
 0x469   : > { %v1638_v28 = vpop.f32.mrb[13].mxu0 }
 0x46a   : > { %v1738_v29 = vmul.f32 0.00390625, %v1477_v23  ;;  %v1739_v30 = vmul.f32 0.00390625, %v1482_v24  ;;  %v3149_v42 = vmul.f32 %v3145_v41, %v1477_v23  ;;  %v3151_v44 = vmul.f32 %v1687_v57, %v1477_v23 }
 0x46b   : > { %v3154_v49 = vmul.f32 %v3145_v41, %v1482_v24  ;;  %v3156_v51 = vmul.f32 %v1687_v57, %v1482_v24 }
 0x46c   : > { %v2568_v37 = vpack.c.bf16 %v1739_v30, %v1738_v29  ;;  %v1690_v47 = vmul.f32 2.0, %v3149_v42  ;;  %v1704_v48 = vmul.f32 2.0, %v3151_v44  ;;  %v1696_v58 = vmul.f32 256.0, %v3149_v42 }
 0x46d   : > { %v1710_v60 = vmul.f32 256.0, %v3151_v44  ;;  %v1691_v1 = vmul.f32 2.0, %v3154_v49  ;;  %v1705_v11 = vmul.f32 2.0, %v3156_v51  ;;  %v1697_v56 = vmul.f32 256.0, %v3154_v49 }
 0x46e   : > { %2569 = vmatpush3.bf16.msra.mxu0 %v2568_v37  ;;  %v1692_v9 = vmul.f32 %v1690_v47, %v1477_v23  ;;  %v1706_v10 = vmul.f32 %v1704_v48, %v1477_v23  ;;  %v1698_v40 = vmul.f32 %v1696_v58, %v3149_v42  ;;  %v1711_v7 = vmul.f32 256.0, %v3156_v51 }
 0x46f   : > { %v1712_v45 = vmul.f32 %v1710_v60, %v3151_v44  ;;  %v1693_v13 = vmul.f32 %v1691_v1, %v1482_v24  ;;  %v1707_v17 = vmul.f32 %v1705_v11, %v1482_v24  ;;  %v1699_v18 = vmul.f32 %v1697_v56, %v3154_v49  ;;  %v1966_v56 = vld [vmem:[%s3262_s8] sm:$0xff] }
 0x470   : > { %v1713_v22 = vmul.f32 %v1711_v7, %v3156_v51 }
 0x471   : > { %2474 = vmatmul.mubr.msk.f32.vlgmr.msra.gmra.mrb[14].mxu0 %vm1205_vm13, %v1740_v32 }
 0x486   : > { %v2417_v46 = vpop.f32.mrb[10].mxu1 }
 0x487   : > { %v2418_v54 = vpop.f32.mrb[11].mxu1 }
 0x488   : > { %v2419_v0 = vadd.f32 %v2418_v54, %v2417_v46 }
 0x48a   : > { %v1639_v3 = vadd.f32 %v2419_v0, %v1638_v28  ;;  %v2420_v52 = vpop.f32.mrb[12].mxu1 }
 0x48b   : > { %v2421_v53 = vpop.f32.mrb[13].mxu1 }
 0x48c   : > { %v1694_v62 = vsub.f32 %v1639_v3, %v1692_v9  ;;  %v1708_v63 = vsub.f32 %v1639_v3, %v1706_v10  ;;  %v2422_v5 = vadd.f32 %v2421_v53, %v2420_v52 }
 0x48e   : > { %v1700_v43 = vadd.f32 %v1698_v40, %v1694_v62  ;;  %v1714_v15 = vadd.f32 %v1712_v45, %v1708_v63  ;;  %v1644_v16 = vadd.f32 %v2468_v26, %v2422_v5  ;;  %v3178_v0 = vpop.f32.mrb[16].mxu1 }
 0x48f   : > { %v3180_v9 = vpop.f32.mrb[17].mxu1 }
 0x490   : > { %v1716_v19 = vmul.f32 %v1714_v15, %v1687_v57  ;;  %v1695_v20 = vsub.f32 %v1644_v16, %v1693_v13  ;;  %v1709_v21 = vsub.f32 %v1644_v16, %v1707_v17  ;;  %v1702_v48 = vmul.f32 %v1700_v43, %v3145_v41 }
 0x491   : > { %v2019_v43 = vsel %vm827_vm12, %v3128_v12, 0 }
 0x492   : > { %v1722_v23 = vadd.f32 1e-05, %v1716_v19  ;;  %v1701_v27 = vadd.f32 %v1699_v18, %v1695_v20  ;;  %v1715_v28 = vadd.f32 %v1713_v22, %v1709_v21  ;;  %v1718_v54 = vadd.f32 1e-05, %v1702_v48  ;;  %v1819_v18 = vld [vmem:[%s3266_s12 + $0x8] sm:$0xff] }
 0x494   : > { %v1717_v29 = vmul.f32 %v1715_v28, %v1687_v57  ;;  %2627 = vrsqrt.f32 %v1722_v23  ;;  %vm1726_vm6 = vcmp.eq.f32.partialorder %v1722_v23, inf  ;;  %v1729_v37 = vand.u32 2147483648, %v1722_v23  ;;  %v1816_v57 = vld [vmem:[%s3265_s11] sm:$0xff] }
 0x495   : > { %vm1728_vm8 = vcmp.eq.f32.partialorder %v1722_v23, 0.0  ;;  %2478 = vmatprep.mubr.msk.f32.mxu0 %vm1820_vm11, %v1816_v57  ;;  %v1703_v58 = vmul.f32 %v1701_v27, %v3145_v41 }
 0x496   : > { %v1723_v30 = vadd.f32 1e-05, %v1717_v29 }
 0x497   : > { %v1719_v60 = vadd.f32 1e-05, %v1703_v58  ;;  %v2059_v58 = vpop.f32.mrb[18].mxu1 }
 0x498   : > { %2629 = vrsqrt.f32 %v1723_v30  ;;  %vm1733_vm9 = vcmp.eq.f32.partialorder %v1723_v30, inf  ;;  %v1736_v39 = vand.u32 2147483648, %v1723_v30  ;;  %vm1735_vm10 = vcmp.eq.f32.partialorder %v1723_v30, 0.0 }
 0x499   : > { %2631 = vrsqrt.f32 %v1718_v54  ;;  %v1967_v54 = vld [vmem:[%s3262_s8 + $0x8] sm:$0xff] }
 0x49a   : > { %2633 = vrsqrt.f32 %v1719_v60  ;;  %v2061_v60 = vpop.f32.mrb[19].mxu1 }
 0x49e   : > { %v2628_v31 = vpop.eup %2627 }
 0x49f   : > { %v1725_v33 = vmul.f32 %v2628_v31, %v1722_v23 }
 0x4a1   : > { %v1727_v26 = vsel %vm1726_vm6, %v1722_v23, %v1725_v33 }
 0x4a2   : > { %v2630_v24 = vpop.eup %2629  ;;  %v1730_v32 = vsel %vm1728_vm8, %v1729_v37, %v1727_v26 }
 0x4a3   : > { %1919 = vrot.lane.b32.xlu1 %v1730_v32, %s2654_s16  ;;  %v1732_v38 = vmul.f32 %v2630_v24, %v1723_v30  ;;  %v2632_v1 = vpop.eup %2631 }
 0x4a4   : > { %v2634_v11 = vpop.eup %2633 }
 0x4a5   : > { %v1734_v46 = vsel %vm1733_vm9, %v1723_v30, %v1732_v38 }
 0x4a6   : > { %v1737_v47 = vsel %vm1735_vm10, %v1736_v39, %v1734_v46 }
 0x4a7   : > { %1921 = vrot.lane.b32.xlu1 %v1737_v47, %s2654_s16 }
 0x515   : > { %v1920_v3 = vpop.permute.xlu1 %1919 }
 0x516   : > { %v1925_v10 = vmul.f32 %v2632_v1, %v1920_v3 }
 0x518   : > { %v1927_v52 = vmul.f32 %v1925_v10, %v3149_v42  ;;  %v2329_v62 = vadd.f32 -1.0, %v1925_v10  ;;  %v1741_v42 = vld [vmem:[#allocation5] sm:$0x1] }
 0x519   : > { %v1922_v40 = vpop.permute.xlu1 %1921 }
 0x51a   : > { %v1926_v45 = vmul.f32 %v2634_v11, %v1922_v40  ;;  %1931 = vrot.lane.b32.xlu1 %v1927_v52, %s2666_s20  ;;  %v2157_v52 = vsub.s32 1, %v2750_v4  ;;  %v2161_v11 = vsub.s32 3, %v2750_v4  ;;  %v2165_v40 = vsub.s32 5, %v2750_v4 }
 0x51c   : > { %v1928_v53 = vmul.f32 %v1926_v45, %v3154_v49  ;;  %v2330_v41 = vadd.f32 -1.0, %v1926_v45  ;;  %v1817_v49 = vld [vmem:[%s3265_s11 + $0x8] sm:$0xff] }
 0x51e   : > { %1945 = vrot.lane.b32.xlu0 %v2330_v41, %s2654_s16  ;;  %1933 = vrot.lane.b32.xlu1 %v1928_v53, %s2666_s20  ;;  %v2643_v53 = vld [vmem:[%s2857_s25] sm:$0x3f]  ;;  %s2572_s25 = smul.u32 48, %s3269_s28 }
 0x51f   : > { %v2158_v41 = vrot.slane %v2643_v53, %v2157_v52 }
 0x520   : > { %s482_s28 = scalar_lea.vmem %s3267_s13, %s2572_s25 }
 0x522   : > { %1970 = vperm.xlu0 %2596, %v1966_v56   ;;  %1943 = vrot.lane.b32.xlu1 %v2329_v62, %s2654_s16  ;;  %v2162_v56 = vrot.slane %v2643_v53, %v2161_v11  ;;  %v2166_v62 = vrot.slane %v2643_v53, %v2165_v40 }
 0x544   : > { %v1811_v63 = vpop.f32.mrb[14].mxu0 }
 0x545   : > { %v1812_v5 = vadd.f32 %v1811_v63, %v1741_v42  ;;  %v2475_v7 = vpop.f32.mrb[15].mxu0  ;;  %v2108_v42 = vrot.slane %v3050_v34, %v2868_v55  ;;  %v2112_v63 = vrot.slane %v3055_v35, %v2868_v55 }
 0x546   : > { %v2173_v7 = vrot.slane %v2158_v41, %v2157_v52 }
 0x547   : > { %v1815_v13 = vmax.f32 %v1812_v5, 0.0  ;;  %v2116_v5 = vrot.slane %v3060_v36, %v2868_v55  ;;  %v2118_v34 = vmul.f32 %v2112_v63, %v3073_v50  ;;  %v2120_v35 = vmul.f32 %v2108_v42, %v3085_v2 }
 0x549   : > { %2476 = vmatprep.subr.msk.mxu0 %vm1662_vm4, %v1815_v13 }
 0x54a   : > { %2477 = vmatpush3.msk.msra.mxu0 %vm1662_vm4, %v1815_v13  ;;  %v2177_v13 = vrot.slane %v2162_v56, %v2157_v52 }
 0x54b   : > { %2479 = vmatmul.mubr.msk.f32.vlgmr.msra.gmra.mrb[16].mxu0 %vm1820_vm11, %v1817_v49  ;;  %2481 = vmatprep.subr.bf16.mxu0 %v2657_v25 }
 0x54c   : > { %2482 = vmatpush3.bf16.msra.mxu0 %v2019_v43  ;;  %2483 = vmatprep.mubr.msk.bf16.mxu0 %vm2663_vm1, %v2657_v25  ;;  %v1818_v25 = vld [vmem:[%s3266_s12] sm:$0xff] }
 0x54f   : > { %2484 = vmatmul.mubr.msk.bf16.vlgmr.msra.gmra.mrb[20].mxu0 %vm2008_vm7, %v3136_v14 }
 0x58c   : > { %v1932_v15 = vpop.permute.xlu1 %1931 }
 0x58d   : > { %v1937_v16 = vsub.f32 %v3151_v44, %v1932_v15  ;;  %v2181_v15 = vrot.slane %v2166_v62, %v2157_v52 }
 0x58f   : > { %1955 = vrot.lane.b32.xlu1 %v1937_v16, %s2653_s15 }
 0x590   : > { %v1934_v12 = vpop.permute.xlu1 %1933  ;;  %v1946_v26 = vpop.permute.xlu0 %1945 }
 0x591   : > { %v1938_v17 = vsub.f32 %v3156_v51, %v1934_v12 }
 0x593   : > { %1957 = vrot.lane.b32.xlu1 %v1938_v17, %s2653_s15  ;;  %v2117_v17 = vmul.f32 %v2108_v42, %v3075_v59 }
 0x594   : > { %v1944_v31 = vpop.permute.xlu1 %1943 }
 0x5a1   : > { %v1971_v43 = vpop.permute.xlu0 %1970 }
 0x601   : > { %v1956_v24 = vpop.permute.xlu1 %1955 }
 0x605   : > { %v1958_v57 = vpop.permute.xlu1 %1957 }
 0x61e   : > { %v2480_v19 = vpop.f32.mrb[16].mxu0 }
 0x61f   : > { %v1902_v14 = vadd.f32 %v2480_v19, %v1819_v18  ;;  %v1896_v20 = vpop.f32.mrb[17].mxu0  ;;  %v2119_v19 = vmul.f32 %v2116_v5, %v3083_v6 }
 0x620   : > { %v1897_v21 = vadd.f32 %v1896_v20, %v1818_v25 }
 0x621   : > { %v2328_v44 = vmul.f32 -1.442695, %v1902_v14  ;;  %v2056_v14 = vadd.f32 %v3178_v0, %v1971_v43 }
 0x622   : > { %v2327_v22 = vmul.f32 -1.442695, %v1897_v21  ;;  %v3212_v23 = vpop.f32.mrb[20].mxu0 }
 0x623   : > { %2635 = vpow2.f32 %v2328_v44  ;;  %v2485_v51 = vpop.f32.mrb[21].mxu0 }
 0x624   : > { %2637 = vpow2.f32 %v2327_v22  ;;  %v3217_v1 = vpop.f32.mrb[22].mxu0 }
 0x625   : > { %v2486_v3 = vpop.f32.mrb[23].mxu0 }
 0x62d   : > { %v2636_v27 = vpop.eup %2635 }
 0x62e   : > { %v2638_v28 = vpop.eup %2637  ;;  %v1912_v29 = vadd.f32 1.0, %v2636_v27  ;;  %v2058_v27 = vadd.f32 %v3180_v9, %v1971_v43 }
 0x62f   : > { %v1911_v30 = vadd.f32 1.0, %v2638_v28 }
 0x630   : > { %2639 = vrcp.f32 %v1912_v29 }
 0x631   : > { %2641 = vrcp.f32 %v1911_v30 }
 0x63a   : > { %v2640_v33 = vpop.eup %2639 }
 0x63b   : > { %v2642_v37 = vpop.eup %2641  ;;  %v1950_v38 = vmul.f32 %v2640_v33, %v1946_v26  ;;  %v1962_v48 = vmul.f32 %v2640_v33, %v1958_v57  ;;  %v2121_v26 = vmul.f32 %v2112_v63, %v3077_v61 }
 0x63c   : > { %v1961_v32 = vmul.f32 %v2642_v37, %v1956_v24  ;;  %v1949_v46 = vmul.f32 %v2642_v37, %v1944_v31  ;;  %v2122_v24 = vmul.f32 %v2116_v5, %v3087_v8 }
 0x63d   : > { %v1952_v39 = vadd.f32 1.0, %v1950_v38 }
 0x63e   : > { %2141 = vperm.xlu1 %2597, %v1961_v32   ;;  %v1951_v47 = vadd.f32 1.0, %v1949_v46 }
 0x642   : > { %2130 = vperm.xlu1 %2597, %v1952_v39  }
 0x646   : > { %2125 = vperm.xlu1 %2597, %v1951_v47  }
 0x64a   : > { %2146 = vperm.xlu1 %2597, %v1962_v48  }
 0x64e   : > { %1975 = vperm.xlu1 %2597, %v1967_v54  }
 0x6bd   : > { %v2142_v10 = vpop.permute.xlu1 %2141 }
 0x6c1   : > { %v2131_v45 = vpop.permute.xlu1 %2130 }
 0x6c2   : > { %v2136_v55 = vmul.f32 %v2131_v45, %v3085_v2  ;;  %v2137_v20 = vmul.f32 %v2131_v45, %v3077_v61  ;;  %v2138_v21 = vmul.f32 %v2131_v45, %v3087_v8  ;;  %v2099_v2 = vadd.f32 %v3212_v23, %v1971_v43 }
 0x6c5   : > { %v2126_v49 = vpop.permute.xlu1 %2125 }
 0x6c6   : > { %v2133_v4 = vmul.f32 %v2126_v49, %v3075_v59  ;;  %v2134_v16 = vmul.f32 %v2126_v49, %v3073_v50  ;;  %v2135_v12 = vmul.f32 %v2126_v49, %v3083_v6 }
 0x6c8   : > { %v2149_v36 = vadd.f32 %v2142_v10, %v2133_v4  ;;  %v2150_v18 = vadd.f32 %v2142_v10, %v2134_v16  ;;  %v2151_v25 = vadd.f32 %v2142_v10, %v2135_v12 }
 0x6c9   : > { %v2147_v44 = vpop.permute.xlu1 %2146 }
 0x6ca   : > { %v2182_v59 = vmul.f32 %v2173_v7, %v2149_v36  ;;  %v2183_v22 = vmul.f32 %v2177_v13, %v2150_v18  ;;  %v2184_v50 = vmul.f32 %v2181_v15, %v2151_v25  ;;  %v2152_v51 = vadd.f32 %v2147_v44, %v2136_v55 }
 0x6cb   : > { %v2153_v28 = vadd.f32 %v2147_v44, %v2137_v20  ;;  %v2154_v29 = vadd.f32 %v2147_v44, %v2138_v21 }
 0x6cc   : > { %v2188_v30 = vadd.f32 %v2182_v59, %v2117_v17  ;;  %v2189_v6 = vadd.f32 %v2183_v22, %v2118_v34  ;;  %v2190_v31 = vadd.f32 %v2184_v50, %v2119_v19  ;;  %v2185_v0 = vmul.f32 %v2173_v7, %v2152_v51 }
 0x6cd   : > { %v2186_v33 = vmul.f32 %v2177_v13, %v2153_v28  ;;  %v2187_v37 = vmul.f32 %v2181_v15, %v2154_v29  ;;  %v1976_v32 = vpop.permute.xlu1 %1975 }
 0x6ce   : > { %v2194_v38 = vadd.f32 %v2188_v30, %v2056_v14  ;;  %v2195_v39 = vadd.f32 %v2189_v6, %v2058_v27  ;;  %v2196_v46 = vadd.f32 %v2190_v31, %v2099_v2  ;;  %v2191_v9 = vadd.f32 %v2185_v0, %v2120_v35 }
 0x6cf   : > { %v2192_v23 = vadd.f32 %v2186_v33, %v2121_v26  ;;  %v2193_v47 = vadd.f32 %v2187_v37, %v2122_v24  ;;  %v2060_v57 = vadd.f32 %v2059_v58, %v1976_v32  ;;  %v2062_v48 = vadd.f32 %v2061_v60, %v1976_v32 }
 0x6d0   : > { %v2200_v54 = vmax.f32 %v2194_v38, 0.0  ;;  %v2201_v3 = vmax.f32 %v2195_v39, 0.0  ;;  %v2202_v10 = vmax.f32 %v2196_v46, 0.0  ;;  %v2102_v61 = vadd.f32 %v3217_v1, %v1976_v32 }
 0x6d1   : > { %v2197_v52 = vadd.f32 %v2191_v9, %v2060_v57  ;;  %v2198_v8 = vadd.f32 %v2192_v23, %v2062_v48 }
 0x6d2   : > { %2206 = vst [vmem:[%s482_s28] sm:$0xff] %v2200_v54  ;;  %2207 = vst [vmem:[%s482_s28 + $0x8] sm:$0xff] %v2201_v3  ;;  %v2199_v11 = vadd.f32 %v2193_v47, %v2102_v61 }
 0x6d3   : > { %2208 = vst.msk [vmem:[%s482_s28 + $0x10] sm:$0xff] %vm993_vm3, %v2202_v10  ;;  %v2203_v40 = vmax.f32 %v2197_v52, 0.0  ;;  %v2204_v45 = vmax.f32 %v2198_v8, 0.0 }
 0x6d4   : > { %v2205_v53 = vmax.f32 %v2199_v11, 0.0 }
 0x6d5   : > { %2209 = vst [vmem:[%s482_s28 + $0x18] sm:$0xff] %v2203_v40  ;;  %2210 = vst [vmem:[%s482_s28 + $0x20] sm:$0xff] %v2204_v45 }
 0x6d6   : > { %2211 = vst.msk [vmem:[%s482_s28 + $0x28] sm:$0xff] %vm993_vm3, %v2205_v53 }
 0x6d7 PF: > { %s25_s27 = sadd.s32 1, %s2650_s27  }
 0x6d8   : > { %p22_p4 = scmp.ge.s32.totalorder %s25_s27, 4  }
 0x6da   :  { %24 = sbr.rel (!%p22_p4) target bundleno = 3 (0x3), region = 108 }

</bundles_post_ra>
